<compile_context>
chip_gen: v7x
topology: tpu7x:2x2x1
jax: 0.10.0
libtpu: 0.0.40
codegen_flags: <defaults>
</compile_context>

<pallas_src>
import math
from functools import partial

import jax
import jax.numpy as jnp
from jax import lax
from jax.experimental import pallas as pl
from jax.experimental.pallas import tpu as pltpu


def sinusoidal_embeddings(length, hidden_size):
    """Rows [:length] of the FixedAbsolutePositionEmbedding buffer."""
    inv_freq = 1.0 / (10000.0 ** (jnp.arange(0, hidden_size, 2, dtype=jnp.float32)
                                  / hidden_size))
    position = jnp.arange(length, dtype=jnp.float32)
    sinusoid_inp = jnp.einsum('i,j->ij', position, inv_freq)
    return jnp.concatenate([jnp.sin(sinusoid_inp), jnp.cos(sinusoid_inp)], axis=-1)


def _attention_kernel(qh_ref, kh_ref, vh_ref, wo_ref, bo_ref, *out_refs,
                      return_attn):
    """One grid step = (batch b, query tile qi, head h)."""
    if return_attn:
        out_ref, attn_ref = out_refs
    else:
        (out_ref,) = out_refs

    h = pl.program_id(2)
    f32, bf16 = jnp.float32, jnp.bfloat16

    q = qh_ref[0, 0]            # (tq, dk) bf16, already scaled by 1/sqrt(dk)
    k = kh_ref[0, 0]            # (S,  dk) bf16
    v = vh_ref[0, 0]            # (S,  dv) bf16

    # Scores: contract the head dim of both operands (no in-kernel transpose).
    s = lax.dot_general(q, k, dimension_numbers=(((1,), (1,)), ((), ())),
                        preferred_element_type=f32)               # (tq, S)

    # f32 softmax; approx reciprocal lands on the (otherwise idle) EUP slot.
    s = s - jnp.max(s, axis=-1, keepdims=True)
    p = jnp.exp(s)
    p = p * pl.reciprocal(jnp.sum(p, axis=-1, keepdims=True), approx=True)

    p_bf = p.astype(bf16)
    if return_attn:
        attn_ref[0, 0] = p_bf                                     # bf16 writeback

    o = jnp.dot(p_bf, v, preferred_element_type=f32)              # (tq, dv)
    contrib = jnp.dot(o.astype(bf16), wo_ref[0],
                      preferred_element_type=f32)                 # (tq, D)

    # Accumulate the output projection over heads (h is the innermost
    # "arbitrary" grid axis, so the f32 output block stays VMEM-resident).
    # The init is merged with the first accumulation: one store, no extra pass.
    @pl.when(h == 0)
    def _():
        out_ref[0] = contrib + bo_ref[...]

    @pl.when(h > 0)
    def _():
        out_ref[0] = out_ref[0] + contrib


def attention_layer_with_rot_emb(queries, keys, values, params, *, n_heads,
                                 use_rot=True, return_attn=True, q_tile=256):
    B, L, D = queries.shape
    _, S, _ = keys.shape
    H = n_heads
    dk = params['wq'].shape[1] // H
    dv = params['wv'].shape[1] // H
    f32, bf16 = jnp.float32, jnp.bfloat16
    scale = 1.0 / math.sqrt(dk)

    # ---- XLA-side projections: one dense, full-width matmul per tensor ------
    # The fixed additive sinusoidal PE (queries/keys only) is folded into
    # per-position projection biases: (x + PE) @ W + b == x @ W + (PE @ W + b).
    bq = params['bq'].astype(f32)                        # (1, H*dk)
    bk = params['bk'].astype(f32)                        # (1, H*dk)
    if use_rot:
        bq_pos = sinusoidal_embeddings(L, D) @ params['wq'].astype(f32) + bq   # (L, H*dk)
        bk_pos = sinusoidal_embeddings(S, D) @ params['wk'].astype(f32) + bk   # (S, H*dk)
    else:
        bq_pos = jnp.broadcast_to(bq, (L, H * dk))
        bk_pos = jnp.broadcast_to(bk, (S, H * dk))

    # 1/sqrt(dk) score scale folded into Qh (saves a (tq,S) VPU multiply/step).
    Qf = (queries.astype(f32) @ params['wq'].astype(f32) + bq_pos[None]) * scale
    Kf = keys.astype(f32) @ params['wk'].astype(f32) + bk_pos[None]
    Vf = values.astype(f32) @ params['wv'].astype(f32) + params['bv'].astype(f32)

    Qh = Qf.reshape(B, L, H, dk).transpose(0, 2, 1, 3).astype(bf16)   # (B, H, L, dk)
    Kh = Kf.reshape(B, S, H, dk).transpose(0, 2, 1, 3).astype(bf16)   # (B, H, S, dk)
    Vh = Vf.reshape(B, S, H, dv).transpose(0, 2, 1, 3).astype(bf16)   # (B, H, S, dv)

    wo_h = params['wo'].reshape(H, dv, D).astype(bf16)                # (H, dv, D)
    bo = params['bo'].astype(f32).reshape(1, D)                       # (1, D)

    # ---- q-axis tiling: pad L to a tile multiple (no tq=L VMEM blow-up) -----
    if L <= q_tile:
        tq = ((L + 7) // 8) * 8           # single sublane-aligned tile
    else:
        tq = q_tile
    Lp = ((L + tq - 1) // tq) * tq
    if Lp != L:
        Qh = jnp.pad(Qh, ((0, 0), (0, 0), (0, Lp - L), (0, 0)))
    nq = Lp // tq

    in_specs = [
        pl.BlockSpec((1, 1, tq, dk), lambda b, qi, h: (b, h, qi, 0)),   # Qh
        pl.BlockSpec((1, 1, S, dk),  lambda b, qi, h: (b, h, 0, 0)),    # Kh
        pl.BlockSpec((1, 1, S, dv),  lambda b, qi, h: (b, h, 0, 0)),    # Vh
        pl.BlockSpec((1, dv, D),     lambda b, qi, h: (h, 0, 0)),       # wo (per head)
        pl.BlockSpec((1, D),         lambda b, qi, h: (0, 0)),          # bo
    ]
    out_shapes = [jax.ShapeDtypeStruct((B, Lp, D), f32)]
    out_specs = [pl.BlockSpec((1, tq, D), lambda b, qi, h: (b, qi, 0))]
    if return_attn:
        out_shapes.append(jax.ShapeDtypeStruct((B, H, Lp, S), bf16))
        out_specs.append(pl.BlockSpec((1, 1, tq, S), lambda b, qi, h: (b, h, qi, 0)))

    # Actual per-step VMEM footprint + headroom (capped for v7x's 64 MiB VMEM).
    step_bytes = (
        2 * 2 * (tq * dk + S * dk + S * dv + dv * D)       # double-buffered bf16 inputs
        + 2 * tq * D * 4                                    # resident f32 out block
        + (2 * tq * S * 2 if return_attn else 0)            # double-buffered bf16 attn tile
        + 6 * tq * S * 4                                    # f32 score/softmax temporaries
    )
    vmem_limit = int(min(max(2 * step_bytes, 16 << 20), 64 << 20))

    results = pl.pallas_call(
        partial(_attention_kernel, return_attn=return_attn),
        out_shape=tuple(out_shapes),
        grid=(B, nq, H),
        in_specs=in_specs,
        out_specs=tuple(out_specs),
        compiler_params=pltpu.CompilerParams(
            dimension_semantics=("parallel", "parallel", "arbitrary"),
            vmem_limit_bytes=vmem_limit),
    )(Qh, Kh, Vh, wo_h, bo)

    if return_attn:
        out, attn = results
    else:
        (out,) = results
        attn = None

    if Lp != L:
        out = out[:, :L]
        if attn is not None:
            attn = attn[:, :, :L]
    return out, attn


def _reference(queries, keys, values, params, *, n_heads, use_rot=True):
    """Pure-JAX reference mirroring the PyTorch forward, for verification."""
    B, L, D = queries.shape
    _, S, _ = keys.shape
    H = n_heads
    dk = params['wq'].shape[1] // H
    dv = params['wv'].shape[1] // H
    if use_rot:
        queries = queries + sinusoidal_embeddings(L, D)[None]
        keys = keys + sinusoidal_embeddings(S, D)[None]
    Q = (queries @ params['wq'] + params['bq']).reshape(B, L, H, dk)
    K = (keys @ params['wk'] + params['bk']).reshape(B, S, H, dk)
    V = (values @ params['wv'] + params['bv']).reshape(B, S, H, dv)
    scores = jnp.einsum('blhe,bshe->bhls', Q, K) / math.sqrt(dk)
    A = jax.nn.softmax(scores, axis=-1)
    O = jnp.einsum('bhls,bshd->blhd', A, V).reshape(B, L, H * dv)
    return O @ params['wo'] + params['bo'], A


if __name__ == "__main__":
    B, L, S, D, H = 2, 256, 256, 64, 4
    dk = dv = D // H

    root = jax.random.PRNGKey(0)
    ks = jax.random.split(root, 11)
    queries = jax.random.normal(ks[0], (B, L, D), jnp.float32)
    keys = jax.random.normal(ks[1], (B, S, D), jnp.float32)
    values = jax.random.normal(ks[2], (B, S, D), jnp.float32)

    w = 0.05
    params = {
        'wq': w * jax.random.normal(ks[3], (D, H * dk), jnp.float32),
        'bq': w * jax.random.normal(ks[4], (1, H * dk), jnp.float32),
        'wk': w * jax.random.normal(ks[5], (D, H * dk), jnp.float32),
        'bk': w * jax.random.normal(ks[6], (1, H * dk), jnp.float32),
        'wv': w * jax.random.normal(ks[7], (D, H * dv), jnp.float32),
        'bv': w * jax.random.normal(ks[8], (1, H * dv), jnp.float32),
        'wo': w * jax.random.normal(ks[9], (H * dv, D), jnp.float32),
        'bo': w * jax.random.normal(ks[10], (1, D), jnp.float32),
    }

    out, attn = attention_layer_with_rot_emb(
        queries, keys, values, params, n_heads=H, use_rot=True, return_attn=True)
    jax.block_until_ready((out, attn))

    ref_out, ref_attn = _reference(queries, keys, values, params,
                                   n_heads=H, use_rot=True)
    assert out.shape == (B, L, D) and attn.shape == (B, H, L, S)
    assert jnp.allclose(out, ref_out, atol=5e-3, rtol=3e-2), \
        float(jnp.max(jnp.abs(out - ref_out)))
    assert jnp.allclose(attn.astype(jnp.float32), ref_attn, atol=2e-3, rtol=5e-2), \
        float(jnp.max(jnp.abs(attn.astype(jnp.float32) - ref_attn)))

    # attn-free fast path (drops the O(B*H*L*S) output and its HBM writeback).
    out2, attn2 = attention_layer_with_rot_emb(
        queries, keys, values, params, n_heads=H, use_rot=True, return_attn=False)
    jax.block_until_ready(out2)
    assert attn2 is None
    assert jnp.allclose(out2, ref_out, atol=5e-3, rtol=3e-2)

    print("KERNEL_OK")
</pallas_src>

<mosaic_0001>
module attributes {stable_mosaic.version = 11 : i64} {
  func.func @_attention_kernel(%arg0: i32, %arg1: i32, %arg2: i32, %arg3: memref<1x1x256x16xbf16, #tpu.memory_space<vmem>>, %arg4: memref<1x1x256x16xbf16, #tpu.memory_space<vmem>>, %arg5: memref<1x1x256x16xbf16, #tpu.memory_space<vmem>>, %arg6: memref<1x16x64xbf16, #tpu.memory_space<vmem>>, %arg7: memref<1x64xf32, #tpu.memory_space<vmem>>, %arg8: memref<1x256x64xf32, #tpu.memory_space<vmem>>, %arg9: memref<1x1x256x256xbf16, #tpu.memory_space<vmem>>) attributes {dimension_semantics = [#tpu.dimension_semantics<parallel>, #tpu.dimension_semantics<parallel>, #tpu.dimension_semantics<arbitrary>], iteration_bounds = array<i64: 2, 1, 4>, scalar_prefetch = 0 : i64, scratch_operands = 0 : i64, tpu.core_type = #tpu.core_type<tc>, window_params = [{transform_indices = @transform_0, window_bounds = array<i64: 1, 1, 256, 16>}, {transform_indices = @transform_1, window_bounds = array<i64: 1, 1, 256, 16>}, {transform_indices = @transform_2, window_bounds = array<i64: 1, 1, 256, 16>}, {transform_indices = @transform_3, window_bounds = array<i64: 1, 16, 64>}, {pipeline_mode = #tpu.pipeline_mode<synchronous>, transform_indices = @transform_4, window_bounds = array<i64: 1, 64>}, {transform_indices = @transform_5, window_bounds = array<i64: 1, 256, 64>}, {transform_indices = @transform_6, window_bounds = array<i64: 1, 1, 256, 256>}]} {
    %c0 = arith.constant 0 : index
    %c0_0 = arith.constant 0 : index
    %c0_1 = arith.constant 0 : index
    %c0_2 = arith.constant 0 : index
    %0 = vector.load %arg3[%c0, %c0_0, %c0_1, %c0_2] : memref<1x1x256x16xbf16, #tpu.memory_space<vmem>>, vector<1x1x256x16xbf16>
    %1 = vector.shape_cast %0 : vector<1x1x256x16xbf16> to vector<256x16xbf16>
    %c0_3 = arith.constant 0 : index
    %c0_4 = arith.constant 0 : index
    %c0_5 = arith.constant 0 : index
    %c0_6 = arith.constant 0 : index
    %2 = vector.load %arg4[%c0_3, %c0_4, %c0_5, %c0_6] : memref<1x1x256x16xbf16, #tpu.memory_space<vmem>>, vector<1x1x256x16xbf16>
    %3 = vector.shape_cast %2 : vector<1x1x256x16xbf16> to vector<256x16xbf16>
    %c0_7 = arith.constant 0 : index
    %c0_8 = arith.constant 0 : index
    %c0_9 = arith.constant 0 : index
    %c0_10 = arith.constant 0 : index
    %4 = vector.load %arg5[%c0_7, %c0_8, %c0_9, %c0_10] : memref<1x1x256x16xbf16, #tpu.memory_space<vmem>>, vector<1x1x256x16xbf16>
    %5 = vector.shape_cast %4 : vector<1x1x256x16xbf16> to vector<256x16xbf16>
    %cst = arith.constant dense<0.000000e+00> : vector<256x256xf32>
    %6 = tpu.matmul %1, %3, %cst {dimension_numbers = #tpu.dot_dimension_numbers<[1], [1], [0], [0], [0, 0, 1, 0], [], []>} : vector<256x16xbf16>, vector<256x16xbf16>, vector<256x256xf32> -> vector<256x256xf32>
    %cst_11 = arith.constant dense<0xFF800000> : vector<256xf32>
    %7 = vector.multi_reduction <maximumf>, %6, %cst_11 [1] : vector<256x256xf32> to vector<256xf32>
    %8 = vector.shape_cast %7 : vector<256xf32> to vector<256x1xf32>
    %9 = vector.broadcast %8 : vector<256x1xf32> to vector<256x256xf32>
    %10 = arith.subf %6, %9 : vector<256x256xf32>
    %11 = math.exp %10 : vector<256x256xf32>
    %cst_12 = arith.constant dense<0.000000e+00> : vector<256xf32>
    %12 = vector.multi_reduction <add>, %11, %cst_12 [1] : vector<256x256xf32> to vector<256xf32>
    %13 = vector.shape_cast %12 : vector<256xf32> to vector<256x1xf32>
    %14 = tpu.reciprocal %13 {approx = true} : vector<256x1xf32> -> vector<256x1xf32>
    %15 = vector.broadcast %14 : vector<256x1xf32> to vector<256x256xf32>
    %16 = arith.mulf %11, %15 : vector<256x256xf32>
    %17 = arith.truncf %16 : vector<256x256xf32> to vector<256x256xbf16>
    %c0_13 = arith.constant 0 : index
    %c0_14 = arith.constant 0 : index
    %c0_15 = arith.constant 0 : index
    %c0_16 = arith.constant 0 : index
    %18 = vector.load %arg9[%c0_13, %c0_14, %c0_15, %c0_16] : memref<1x1x256x256xbf16, #tpu.memory_space<vmem>>, vector<1x1x256x256xbf16>
    %19 = vector.shape_cast %18 : vector<1x1x256x256xbf16> to vector<256x256xbf16>
    %20 = vector.shape_cast %17 : vector<256x256xbf16> to vector<1x1x256x256xbf16>
    tpu.vector_store %arg9[%c0_13, %c0_14, %c0_15, %c0_16], %20 {strides = array<i32>} : memref<1x1x256x256xbf16, #tpu.memory_space<vmem>>, vector<1x1x256x256xbf16>,
    %cst_17 = arith.constant dense<0.000000e+00> : vector<256x16xf32>
    %21 = tpu.matmul %17, %5, %cst_17 {dimension_numbers = #tpu.dot_dimension_numbers<[1], [0], [0], [1], [0, 0, 1, 1], [], []>} : vector<256x256xbf16>, vector<256x16xbf16>, vector<256x16xf32> -> vector<256x16xf32>
    %22 = arith.truncf %21 : vector<256x16xf32> to vector<256x16xbf16>
    %c0_18 = arith.constant 0 : index
    %c0_19 = arith.constant 0 : index
    %c0_20 = arith.constant 0 : index
    %23 = vector.load %arg6[%c0_18, %c0_19, %c0_20] : memref<1x16x64xbf16, #tpu.memory_space<vmem>>, vector<1x16x64xbf16>
    %24 = vector.shape_cast %23 : vector<1x16x64xbf16> to vector<16x64xbf16>
    %cst_21 = arith.constant dense<0.000000e+00> : vector<256x64xf32>
    %25 = tpu.matmul %22, %24, %cst_21 {dimension_numbers = #tpu.dot_dimension_numbers<[1], [0], [0], [1], [0, 0, 1, 1], [], []>} : vector<256x16xbf16>, vector<16x64xbf16>, vector<256x64xf32> -> vector<256x64xf32>
    %c0_i32 = arith.constant 0 : i32
    %26 = arith.cmpi eq, %arg2, %c0_i32 : i32
    %27 = arith.extui %26 : i1 to i32
    %c0_i32_22 = arith.constant 0 : i32
    %28 = arith.cmpi ne, %27, %c0_i32_22 : i32
    scf.if %28 {
      %c0_25 = arith.constant 0 : index
      %c0_26 = arith.constant 0 : index
      %32 = vector.load %arg7[%c0_25, %c0_26] : memref<1x64xf32, #tpu.memory_space<vmem>>, vector<1x64xf32>
      %33 = vector.broadcast %32 : vector<1x64xf32> to vector<256x64xf32>
      %34 = arith.addf %25, %33 : vector<256x64xf32>
      %c0_27 = arith.constant 0 : index
      %c0_28 = arith.constant 0 : index
      %c0_29 = arith.constant 0 : index
      %35 = vector.load %arg8[%c0_27, %c0_28, %c0_29] : memref<1x256x64xf32, #tpu.memory_space<vmem>>, vector<1x256x64xf32>
      %36 = vector.shape_cast %35 : vector<1x256x64xf32> to vector<256x64xf32>
      %37 = vector.shape_cast %34 : vector<256x64xf32> to vector<1x256x64xf32>
      tpu.vector_store %arg8[%c0_27, %c0_28, %c0_29], %37 {strides = array<i32>} : memref<1x256x64xf32, #tpu.memory_space<vmem>>, vector<1x256x64xf32>,
    } else {
    }
    %c0_i32_23 = arith.constant 0 : i32
    %29 = arith.cmpi sgt, %arg2, %c0_i32_23 : i32
    %30 = arith.extui %29 : i1 to i32
    %c0_i32_24 = arith.constant 0 : i32
    %31 = arith.cmpi ne, %30, %c0_i32_24 : i32
    scf.if %31 {
      %c0_25 = arith.constant 0 : index
      %c0_26 = arith.constant 0 : index
      %c0_27 = arith.constant 0 : index
      %32 = vector.load %arg8[%c0_25, %c0_26, %c0_27] : memref<1x256x64xf32, #tpu.memory_space<vmem>>, vector<1x256x64xf32>
      %33 = vector.shape_cast %32 : vector<1x256x64xf32> to vector<256x64xf32>
      %34 = arith.addf %33, %25 : vector<256x64xf32>
      %c0_28 = arith.constant 0 : index
      %c0_29 = arith.constant 0 : index
      %c0_30 = arith.constant 0 : index
      %35 = vector.load %arg8[%c0_28, %c0_29, %c0_30] : memref<1x256x64xf32, #tpu.memory_space<vmem>>, vector<1x256x64xf32>
      %36 = vector.shape_cast %35 : vector<1x256x64xf32> to vector<256x64xf32>
      %37 = vector.shape_cast %34 : vector<256x64xf32> to vector<1x256x64xf32>
      tpu.vector_store %arg8[%c0_28, %c0_29, %c0_30], %37 {strides = array<i32>} : memref<1x256x64xf32, #tpu.memory_space<vmem>>, vector<1x256x64xf32>,
    } else {
    }
    return
  }
  func.func @transform_0(%arg0: i32, %arg1: i32, %arg2: i32) -> (i32, i32, i32, i32) {
    %c0_i32 = arith.constant 0 : i32
    %c0_i32_0 = arith.constant 0 : i32
    return %arg0, %arg2, %arg1, %c0_i32 : i32, i32, i32, i32
  }
  func.func @transform_1(%arg0: i32, %arg1: i32, %arg2: i32) -> (i32, i32, i32, i32) {
    %c0_i32 = arith.constant 0 : i32
    %c0_i32_0 = arith.constant 0 : i32
    %c0_i32_1 = arith.constant 0 : i32
    return %arg0, %arg2, %c0_i32, %c0_i32_0 : i32, i32, i32, i32
  }
  func.func @transform_2(%arg0: i32, %arg1: i32, %arg2: i32) -> (i32, i32, i32, i32) {
    %c0_i32 = arith.constant 0 : i32
    %c0_i32_0 = arith.constant 0 : i32
    %c0_i32_1 = arith.constant 0 : i32
    return %arg0, %arg2, %c0_i32, %c0_i32_0 : i32, i32, i32, i32
  }
  func.func @transform_3(%arg0: i32, %arg1: i32, %arg2: i32) -> (i32, i32, i32) {
    %c0_i32 = arith.constant 0 : i32
    %c0_i32_0 = arith.constant 0 : i32
    %c0_i32_1 = arith.constant 0 : i32
    return %arg2, %c0_i32, %c0_i32_0 : i32, i32, i32
  }
  func.func @transform_4(%arg0: i32, %arg1: i32, %arg2: i32) -> (i32, i32) {
    %c0_i32 = arith.constant 0 : i32
    %c0_i32_0 = arith.constant 0 : i32
    %c0_i32_1 = arith.constant 0 : i32
    return %c0_i32, %c0_i32_0 : i32, i32
  }
  func.func @transform_5(%arg0: i32, %arg1: i32, %arg2: i32) -> (i32, i32, i32) {
    %c0_i32 = arith.constant 0 : i32
    %c0_i32_0 = arith.constant 0 : i32
    return %arg0, %arg1, %c0_i32 : i32, i32, i32
  }
  func.func @transform_6(%arg0: i32, %arg1: i32, %arg2: i32) -> (i32, i32, i32, i32) {
    %c0_i32 = arith.constant 0 : i32
    %c0_i32_0 = arith.constant 0 : i32
    return %arg0, %arg2, %arg1, %c0_i32 : i32, i32, i32, i32
  }
}

</mosaic_0001>

<bundles_post_ra>
// kernel: tpu_custom_call.1
= control target key start
LH: loop header
LB: loop body
LE: loop exit
PB: predicated region body
PF: predicated region fallthrough
CT: control target
= control target key end

     0   :  { %12 = vsyncpa [#allocation3], 0  ;;  %s4545_s0 = inlined_call_operand.vmem [shape: bf16[2,4,256,16], index: 0, kind: input, shape index: {}]   ;;  %s4546_s1 = inlined_call_operand.vmem [shape: bf16[2,4,256,16], index: 1, kind: input, shape index: {}]   ;;  %s4547_s2 = inlined_call_operand.vmem [shape: bf16[2,4,256,16], index: 2, kind: input, shape index: {}]   ;;  %s4548_s3 = inlined_call_operand.vmem [shape: bf16[4,16,64], index: 3, kind: input, shape index: {}]   ;;  %s4549_s4 = inlined_call_operand.vmem [shape: f32[1,64], index: 4, kind: input, shape index: {}]   ;;  %s4550_s5 = inlined_call_operand.vmem [shape: f32[2,256,64], index: 5, kind: output, shape index: {0}]   ;;  %s4551_s6 = inlined_call_operand.hbm [shape: bf16[2,4,256,256], index: 6, kind: output, shape index: {1}]  }
   0x1   :  { %14 = vsyncpa [#allocation3 + $0x1], 0  ;;  %s3408_s21 = smov 0   ;;  %s3410_s22 = smov 0  }
   0x2   :  { %s3412_s23 = smov 0   ;;  %s3414_s24 = smov 0  }
   0x3   :  { %s3416_s25 = smov 0   ;;  %s3418_s26 = smov 0  }
   0x4   :  { %s3420_s27 = smov 0   ;;  %s3422_s28 = smov 0  }
   0x5 LB: > { %s2550_s29 = sadd.s32 4294967295, %s3368_s28   ;;  %s2551_s30 = sadd.s32 4294967294, %s3368_s28   ;;  %s3368_s28 = sphi %s3422_s28, %s20_s28   ;;  %s3364_s27 = sphi %s3420_s27, %s4648_s27   ;;  %s3360_s26 = sphi %s3418_s26, %s4647_s26   ;;  %s3356_s25 = sphi %s3416_s25, %s4646_s25   ;;  %s3352_s24 = sphi %s3414_s24, %s4645_s24   ;;  %s3348_s23 = sphi %s3412_s23, %s4644_s23   ;;  %s3344_s22 = sphi %s3410_s22, %s4643_s22   ;;  %s3340_s21 = sphi %s3408_s21, %s4642_s21  }
   0x6   : > { %s32_s7 = sadd.s32 1, %s3360_s26  ;;  %s39_s8 = sadd.s32 1, %s3364_s27 }
   0x7   : > { %p33_p0 = scmp.ge.s32.totalorder %s32_s7, 4  ;;  %p221_p1 = scmp.ne.s32.totalorder %s3348_s23, %s3344_s22 }
   0x8   : > { %p222_p2 = scmp.eq.s32.totalorder %s2550_s29, 7  ;;  %p227_p5 = scmp.ne.s32.totalorder %s3344_s22, %s3340_s21 }
   0x9   : > { %s4650_s7 = smov (%p33_p0, %s32_s7), 0  ;;  %s4652_s8 = smov (!%p33_p0, %s39_s8), %s3364_s27 }
   0xa   : > { %4580 = sst [smem:[#allocation5_spill]] %s4650_s7  ;;  %s205_s9 = ssub.s32 %s3360_s26, %s4650_s7 }
   0xb   : > { %p3459_p3 = por %p222_p2, %p221_p1  ;;  %p41_p4 = scmp.ge.s32.totalorder %s4652_s8, 2 }
   0xc   : > { %p228_p6 = scmp.eq.s32.totalorder %s2551_s30, 7  ;;  %p2554_p7 = scmp.ge.s32.totalorder %s3368_s28, 1 }
   0xd   : > { %s4654_s8 = smov (%p41_p4, %s4652_s8), 0  ;;  %p298_p9 = scmp.lt.s32.totalorder %s3368_s28, 9 }
   0xe   : > { %4582 = sst [smem:[#allocation6_spill]] %s4654_s8  ;;  %p3468_p8 = por %p228_p6, %p227_p5 }
   0xf   : > { %s204_s12 = ssub.s32 %s3364_s27, %s4654_s8  ;;  %s211_s13 = sadd.s32 1, %s3348_s23 }
  0x10   : > { %s206_s14 = sor.u32 %s205_s9, %s204_s12  ;;  %p299_p10 = pnand %p2554_p7, %p298_p9 }
  0x11   : > { %p209_p11 = scmp.eq.s32.totalorder %s206_s14, 0 }
  0x12   : > { %302 = sbr.rel (%p299_p10) target bundleno = 1309 (0x51d), region = 40 }
  0x13   : > { %s3477_s15 = scalar_select %p209_p11, %s3348_s23, %s211_s13  }
  0x19   : > { %p369_p12 = scmp.lt.s32.totalorder %s3356_s25, 1  ;;  %p371_p13 = scmp.lt.s32.totalorder %s3352_s24, 3  ;;  %vm673_vm0 = vcmask 130048  }
  0x1a   : > { %s365_s29 = sand.u32 1, %s3344_s22   ;;  %p2682_p0 = scmp.ne.s32.totalorder %s3352_s24, 0 }
  0x1b   : > { %s370_s16 = scalar_select %p369_p12, %s3356_s25, 1 }
  0x1c   : > { %s3483_s17 = scalar_select %p371_p13, %s3352_s24, 3 }
  0x1d   : > { %s2557_s18 = sshll.u32 %s370_s16, 7  ;;  %s2692_s19 = sshll.u32 %s370_s16, 8  ;;  %vm2200_vm1 = vcmask (!%p2682_p0), 523264  }
  0x1e   : > { %s2556_s20 = sshll.u32 %s3483_s17, 5  ;;  %s3489_s9 = scalar_lea.vmem %s4550_s5, %s2692_s19 }
  0x1f   : > { %s378_s12 = sadd.s32 %s2557_s18, %s2556_s20  ;;  %s2555_s30 = sshll.u32 %s365_s29, 8 }
  0x20   : > { %s3491_s13 = sshll.u32 %s378_s12, 2  ;;  %s4048_s12 = scalar_lea.vmem [#allocation2], %s2555_s30 }
  0x21   : > { %s3497_s7 = scalar_lea.vmem %s4546_s1, %s3491_s13  ;;  %s3514_s18 = scalar_lea.vmem %s4545_s0, %s3491_s13 }
  0x22   : > { %v3033_v0 = vld [vmem:[%s3497_s7 + $0x40] sm:$0xff]   ;;  %v3035_v2 = vld [vmem:[%s3497_s7 + $0x48] sm:$0xff]   ;;  %v3037_v6 = vld [vmem:[%s3497_s7 + $0x50] sm:$0xff]   ;;  %s3781_s20 = scalar_lea.vmem %s4547_s2, %s3491_s13  ;;  %s2691_s13 = sshll.u32 %s3483_s17, 3 }
  0x23   : > { %v3034_v1 = vld [vmem:[%s3497_s7] sm:$0xff]   ;;  %2952 = vmatprep.subr.msk.bf16.mxu0 %vm673_vm0, %v3033_v0  ;;  %v3036_v4 = vld [vmem:[%s3497_s7 + $0x8] sm:$0xff]   ;;  %v3038_v7 = vld [vmem:[%s3497_s7 + $0x10] sm:$0xff]   ;;  %s404_s16 = scalar_lea.vmem %s4548_s3, %s2691_s13 }
  0x24   : > { %v723_v3 = vsel %vm673_vm0, %v3034_v1, 0  ;;  %v726_v5 = vsel %vm673_vm0, %v3036_v4, 0  ;;  %v3049_v8 = vld [vmem:[%s3514_s18] sm:$0xff]   ;;  %v729_v9 = vsel %vm673_vm0, %v3038_v7, 0  ;;  %v3039_v10 = vld [vmem:[%s3497_s7 + $0x58] sm:$0xff]   ;;  %v3043_v16 = vld [vmem:[%s3497_s7 + $0x68] sm:$0xff]  }
  0x25   : > { %2726 = vmatpush3.bf16.xpose.msra.mxu0 %v723_v3  ;;  %2741 = vmatprep.mubr.msk.bf16.mxu0 %vm673_vm0, %v3049_v8  ;;  %v3040_v11 = vld [vmem:[%s3497_s7 + $0x18] sm:$0xff]   ;;  %v3041_v13 = vld [vmem:[%s3497_s7 + $0x60] sm:$0xff]   ;;  %v3044_v17 = vld [vmem:[%s3497_s7 + $0x28] sm:$0xff]  }
  0x26   : > { %2953 = vmatprep.subr.msk.bf16.mxu0 %vm673_vm0, %v3035_v2  ;;  %v732_v12 = vsel %vm673_vm0, %v3040_v11, 0  ;;  %v3042_v14 = vld [vmem:[%s3497_s7 + $0x20] sm:$0xff]   ;;  %v738_v18 = vsel %vm673_vm0, %v3044_v17, 0  ;;  %v3045_v19 = vld [vmem:[%s3497_s7 + $0x70] sm:$0xff]   ;;  %v3047_v22 = vld [vmem:[%s3497_s7 + $0x78] sm:$0xff]  }
  0x27   : > { %v735_v15 = vsel %vm673_vm0, %v3042_v14, 0  ;;  %v3046_v20 = vld [vmem:[%s3497_s7 + $0x30] sm:$0xff]   ;;  %v3048_v23 = vld [vmem:[%s3497_s7 + $0x38] sm:$0xff]   ;;  %v3050_v25 = vld [vmem:[%s3514_s18 + $0x8] sm:$0xff]  }
  0x28   : > { %v741_v21 = vsel %vm673_vm0, %v3046_v20, 0  ;;  %v744_v24 = vsel %vm673_vm0, %v3048_v23, 0  ;;  %v3051_v26 = vld [vmem:[%s3514_s18 + $0x10] sm:$0xff]   ;;  %v3052_v27 = vld [vmem:[%s3514_s18 + $0x18] sm:$0xff]   ;;  %v3053_v28 = vld [vmem:[%s3514_s18 + $0x20] sm:$0xff]  }
  0x29   : > { %v3054_v29 = vld [vmem:[%s3514_s18 + $0x28] sm:$0xff]   ;;  %v3055_v30 = vld [vmem:[%s3514_s18 + $0x30] sm:$0xff]   ;;  %v3056_v31 = vld [vmem:[%s3514_s18 + $0x38] sm:$0xff]  }
  0x2a   : > { %v3057_v32 = vld [vmem:[%s3514_s18 + $0x40] sm:$0xff]   ;;  %v3058_v33 = vld [vmem:[%s3514_s18 + $0x48] sm:$0xff]   ;;  %v3059_v34 = vld [vmem:[%s3514_s18 + $0x50] sm:$0xff]  }
  0x2b   : > { %v3060_v35 = vld [vmem:[%s3514_s18 + $0x58] sm:$0xff]   ;;  %v3061_v36 = vld [vmem:[%s3514_s18 + $0x60] sm:$0xff]   ;;  %v3062_v37 = vld [vmem:[%s3514_s18 + $0x68] sm:$0xff]  }
  0x2c   : > { %v3063_v38 = vld [vmem:[%s3514_s18 + $0x70] sm:$0xff]   ;;  %v3064_v39 = vld [vmem:[%s3514_s18 + $0x78] sm:$0xff]  }
  0x2d   : > { %2728 = vmatpush3.bf16.xpose.msra.mxu0 %v726_v5 }
  0x2e   : > { %2954 = vmatprep.subr.msk.bf16.mxu0 %vm673_vm0, %v3037_v6 }
  0x35   : > { %2730 = vmatpush3.bf16.xpose.msra.mxu0 %v729_v9 }
  0x36   : > { %2955 = vmatprep.subr.msk.bf16.mxu0 %vm673_vm0, %v3039_v10 }
  0x3d   : > { %2732 = vmatpush3.bf16.xpose.msra.mxu0 %v732_v12 }
  0x3e   : > { %2956 = vmatprep.subr.msk.bf16.mxu0 %vm673_vm0, %v3041_v13 }
  0x45   : > { %2734 = vmatpush3.bf16.xpose.msra.mxu0 %v735_v15 }
  0x46   : > { %2957 = vmatprep.subr.msk.bf16.mxu0 %vm673_vm0, %v3043_v16 }
  0x4d   : > { %2736 = vmatpush3.bf16.xpose.msra.mxu0 %v738_v18 }
  0x4e   : > { %2958 = vmatprep.subr.msk.bf16.mxu0 %vm673_vm0, %v3045_v19 }
  0x55   : > { %2738 = vmatpush3.bf16.xpose.msra.mxu0 %v741_v21 }
  0x56   : > { %2959 = vmatprep.subr.msk.bf16.mxu0 %vm673_vm0, %v3047_v22 }
  0x5d   : > { %2740 = vmatpush3.bf16.xpose.msra.mxu0 %v744_v24 }
  0x64   : > { %2742 = vmatmul.mubr.msk.bf16.vlgmr.msra.gmra.mrb[0].mxu0 %vm673_vm0, %v3049_v8 }
  0x65   : > { %2743 = vmatprep.mubr.msk.bf16.mxu0 %vm673_vm0, %v3050_v25 }
  0x6c   : > { %2744 = vmatmul.mubr.msk.bf16.gmra.mrb[4].mxu0 %vm673_vm0, %v3050_v25 }
  0x6d   : > { %2745 = vmatprep.mubr.msk.bf16.mxu0 %vm673_vm0, %v3051_v26 }
  0x74   : > { %2746 = vmatmul.mubr.msk.bf16.gmra.mrb[8].mxu0 %vm673_vm0, %v3051_v26 }
  0x75   : > { %2747 = vmatprep.mubr.msk.bf16.mxu0 %vm673_vm0, %v3052_v27 }
  0x7c   : > { %2748 = vmatmul.mubr.msk.bf16.gmra.mrb[12].mxu0 %vm673_vm0, %v3052_v27 }
  0x7d   : > { %2749 = vmatprep.mubr.msk.bf16.mxu0 %vm673_vm0, %v3053_v28 }
  0x84   : > { %2750 = vmatmul.mubr.msk.bf16.gmra.mrb[16].mxu0 %vm673_vm0, %v3053_v28 }
  0x85   : > { %2751 = vmatprep.mubr.msk.bf16.mxu0 %vm673_vm0, %v3054_v29 }
  0x8c   : > { %2752 = vmatmul.mubr.msk.bf16.gmra.mrb[20].mxu0 %vm673_vm0, %v3054_v29 }
  0x8d   : > { %2753 = vmatprep.mubr.msk.bf16.mxu0 %vm673_vm0, %v3055_v30 }
  0x94   : > { %2754 = vmatmul.mubr.msk.bf16.gmra.mrb[24].mxu0 %vm673_vm0, %v3055_v30 }
  0x95   : > { %2755 = vmatprep.mubr.msk.bf16.mxu0 %vm673_vm0, %v3056_v31 }
  0x9c   : > { %2756 = vmatmul.mubr.msk.bf16.gmra.mrb[28].mxu0 %vm673_vm0, %v3056_v31 }
  0x9d   : > { %2757 = vmatprep.mubr.msk.bf16.mxu0 %vm673_vm0, %v3057_v32 }
  0xa4   : > { %2758 = vmatmul.mubr.msk.bf16.gmra.mrb[32].mxu0 %vm673_vm0, %v3057_v32 }
  0xa5   : > { %2759 = vmatprep.mubr.msk.bf16.mxu0 %vm673_vm0, %v3058_v33 }
  0xac   : > { %2760 = vmatmul.mubr.msk.bf16.gmra.mrb[36].mxu0 %vm673_vm0, %v3058_v33 }
  0xad   : > { %2761 = vmatprep.mubr.msk.bf16.mxu0 %vm673_vm0, %v3059_v34 }
  0xb4   : > { %2762 = vmatmul.mubr.msk.bf16.gmra.mrb[40].mxu0 %vm673_vm0, %v3059_v34 }
  0xb5   : > { %2763 = vmatprep.mubr.msk.bf16.mxu0 %vm673_vm0, %v3060_v35 }
  0xbc   : > { %2764 = vmatmul.mubr.msk.bf16.gmra.mrb[44].mxu0 %vm673_vm0, %v3060_v35 }
  0xbd   : > { %2765 = vmatprep.mubr.msk.bf16.mxu0 %vm673_vm0, %v3061_v36 }
  0xc4   : > { %2766 = vmatmul.mubr.msk.bf16.gmra.mrb[48].mxu0 %vm673_vm0, %v3061_v36 }
  0xc5   : > { %2767 = vmatprep.mubr.msk.bf16.mxu0 %vm673_vm0, %v3062_v37 }
  0xcc   : > { %2768 = vmatmul.mubr.msk.bf16.gmra.mrb[52].mxu0 %vm673_vm0, %v3062_v37 }
  0xcd   : > { %2769 = vmatprep.mubr.msk.bf16.mxu0 %vm673_vm0, %v3063_v38 }
  0xd4   : > { %2770 = vmatmul.mubr.msk.bf16.gmra.mrb[56].mxu0 %vm673_vm0, %v3063_v38 }
  0xd5   : > { %2771 = vmatprep.mubr.msk.bf16.mxu0 %vm673_vm0, %v3064_v39 }
  0xdc   : > { %2772 = vmatmul.mubr.msk.bf16.gmra.mrb[60].mxu0 %vm673_vm0, %v3064_v39 }
 0x137   : > { %v3585_v40 = vpop.f32.mrb[0].mxu0 }
 0x138   : > { %v3587_v41 = vpop.f32.mrb[1].mxu0 }
 0x139   : > { %v3589_v42 = vpop.f32.mrb[2].mxu0  ;;  %v963_v43 = vmax.f32 %v3585_v40, %v3587_v41 }
 0x13a   : > { %v3593_v44 = vpop.f32.mrb[3].mxu0 }
 0x13b   : > { %v966_v45 = vmax.f32 %v3589_v42, %v3593_v44 }
 0x13f   : > { %v3597_v46 = vpop.f32.mrb[4].mxu0 }
 0x140   : > { %v3599_v47 = vpop.f32.mrb[5].mxu0 }
 0x141   : > { %v3601_v48 = vpop.f32.mrb[6].mxu0  ;;  %v969_v49 = vmax.f32 %v3597_v46, %v3599_v47 }
 0x142   : > { %v3605_v50 = vpop.f32.mrb[7].mxu0 }
 0x143   : > { %v972_v51 = vmax.f32 %v3601_v48, %v3605_v50 }
 0x147   : > { %v3609_v52 = vpop.f32.mrb[8].mxu0 }
 0x148   : > { %v3611_v53 = vpop.f32.mrb[9].mxu0 }
 0x149   : > { %v3613_v54 = vpop.f32.mrb[10].mxu0  ;;  %v975_v55 = vmax.f32 %v3609_v52, %v3611_v53 }
 0x14a   : > { %v3617_v56 = vpop.f32.mrb[11].mxu0 }
 0x14b   : > { %976 = vmax.xlane.f32.xlu0 %v975_v55  ;;  %v978_v57 = vmax.f32 %v3613_v54, %v3617_v56 }
 0x14f   : > { %979 = vmax.xlane.f32.xlu0 %v978_v57  ;;  %v3621_v58 = vpop.f32.mrb[12].mxu0 }
 0x150   : > { %v3623_v59 = vpop.f32.mrb[13].mxu0 }
 0x151   : > { %v3625_v60 = vpop.f32.mrb[14].mxu0  ;;  %v981_v61 = vmax.f32 %v3621_v58, %v3623_v59 }
 0x152   : > { %v3629_v62 = vpop.f32.mrb[15].mxu0 }
 0x153   : > { %982 = vmax.xlane.f32.xlu1 %v981_v61  ;;  %v984_v63 = vmax.f32 %v3625_v60, %v3629_v62 }
 0x157   : > { %985 = vmax.xlane.f32.xlu1 %v984_v63  ;;  %v3633_v0 = vpop.f32.mrb[16].mxu0 }
 0x158   : > { %v3635_v1 = vpop.f32.mrb[17].mxu0 }
 0x159   : > { %v3637_v2 = vpop.f32.mrb[18].mxu0  ;;  %v987_v3 = vmax.f32 %v3633_v0, %v3635_v1 }
 0x15a   : > { %v3641_v4 = vpop.f32.mrb[19].mxu0 }
 0x15b   : > { %988 = vmax.xlane.f32.xlu0 %v987_v3  ;;  %v990_v5 = vmax.f32 %v3637_v2, %v3641_v4 }
 0x15d   : > { %991 = vmax.xlane.f32.xlu1 %v990_v5 }
 0x15f   : > { %v3645_v6 = vpop.f32.mrb[20].mxu0 }
 0x160   : > { %v3647_v7 = vpop.f32.mrb[21].mxu0 }
 0x161   : > { %v3649_v8 = vpop.f32.mrb[22].mxu0  ;;  %v993_v9 = vmax.f32 %v3645_v6, %v3647_v7 }
 0x162   : > { %v3653_v10 = vpop.f32.mrb[23].mxu0 }
 0x163   : > { %994 = vmax.xlane.f32.xlu0 %v993_v9  ;;  %v996_v11 = vmax.f32 %v3649_v8, %v3653_v10 }
 0x165   : > { %997 = vmax.xlane.f32.xlu1 %v996_v11 }
 0x167   : > { %v3657_v12 = vpop.f32.mrb[24].mxu0 }
 0x168   : > { %v3659_v13 = vpop.f32.mrb[25].mxu0 }
 0x169   : > { %v3661_v14 = vpop.f32.mrb[26].mxu0  ;;  %v999_v15 = vmax.f32 %v3657_v12, %v3659_v13 }
 0x16a   : > { %v3665_v16 = vpop.f32.mrb[27].mxu0 }
 0x16b   : > { %1000 = vmax.xlane.f32.xlu0 %v999_v15  ;;  %v1002_v17 = vmax.f32 %v3661_v14, %v3665_v16 }
 0x16d   : > { %1003 = vmax.xlane.f32.xlu1 %v1002_v17 }
 0x16f   : > { %964 = vmax.xlane.f32.xlu0 %v963_v43  ;;  %v3669_v18 = vpop.f32.mrb[28].mxu0 }
 0x170   : > { %v3671_v19 = vpop.f32.mrb[29].mxu0 }
 0x171   : > { %967 = vmax.xlane.f32.xlu1 %v966_v45  ;;  %v3673_v20 = vpop.f32.mrb[30].mxu0  ;;  %v1005_v21 = vmax.f32 %v3669_v18, %v3671_v19 }
 0x172   : > { %v3677_v22 = vpop.f32.mrb[31].mxu0 }
 0x173   : > { %1006 = vmax.xlane.f32.xlu0 %v1005_v21  ;;  %v1008_v23 = vmax.f32 %v3673_v20, %v3677_v22 }
 0x175   : > { %1009 = vmax.xlane.f32.xlu1 %v1008_v23 }
 0x177   : > { %970 = vmax.xlane.f32.xlu0 %v969_v49  ;;  %v3681_v24 = vpop.f32.mrb[32].mxu0 }
 0x178   : > { %v3683_v25 = vpop.f32.mrb[33].mxu0 }
 0x179   : > { %973 = vmax.xlane.f32.xlu1 %v972_v51  ;;  %v3685_v26 = vpop.f32.mrb[34].mxu0  ;;  %v1011_v27 = vmax.f32 %v3681_v24, %v3683_v25 }
 0x17a   : > { %v3689_v28 = vpop.f32.mrb[35].mxu0 }
 0x17b   : > { %1012 = vmax.xlane.f32.xlu0 %v1011_v27  ;;  %v1014_v29 = vmax.f32 %v3685_v26, %v3689_v28 }
 0x17d   : > { %1015 = vmax.xlane.f32.xlu1 %v1014_v29 }
 0x17f   : > { %v3693_v30 = vpop.f32.mrb[36].mxu0 }
 0x180   : > { %v3695_v31 = vpop.f32.mrb[37].mxu0 }
 0x181   : > { %v3697_v32 = vpop.f32.mrb[38].mxu0  ;;  %v1017_v33 = vmax.f32 %v3693_v30, %v3695_v31 }
 0x182   : > { %v3701_v34 = vpop.f32.mrb[39].mxu0 }
 0x183   : > { %1018 = vmax.xlane.f32.xlu0 %v1017_v33  ;;  %v1020_v35 = vmax.f32 %v3697_v32, %v3701_v34 }
 0x185   : > { %1021 = vmax.xlane.f32.xlu1 %v1020_v35 }
 0x187   : > { %v3705_v36 = vpop.f32.mrb[40].mxu0 }
 0x188   : > { %v3707_v37 = vpop.f32.mrb[41].mxu0 }
 0x189   : > { %v3709_v38 = vpop.f32.mrb[42].mxu0  ;;  %v1023_v39 = vmax.f32 %v3705_v36, %v3707_v37 }
 0x18a   : > { %v3713_v43 = vpop.f32.mrb[43].mxu0 }
 0x18b   : > { %4584 = vst [vmem:[#allocation7_spill] sm:$0xff] %v3713_v43  ;;  %1024 = vmax.xlane.f32.xlu0 %v1023_v39  ;;  %v1026_v45 = vmax.f32 %v3709_v38, %v3713_v43 }
 0x18d   : > { %1027 = vmax.xlane.f32.xlu1 %v1026_v45 }
 0x18f   : > { %v3717_v49 = vpop.f32.mrb[44].mxu0 }
 0x190   : > { %4585 = vst [vmem:[#allocation8_spill] sm:$0xff] %v3717_v49  ;;  %v3719_v51 = vpop.f32.mrb[45].mxu0 }
 0x191   : > { %4586 = vst [vmem:[#allocation9_spill] sm:$0xff] %v3719_v51  ;;  %v3721_v55 = vpop.f32.mrb[46].mxu0  ;;  %v1029_v57 = vmax.f32 %v3717_v49, %v3719_v51 }
 0x192   : > { %4587 = vst [vmem:[#allocation10_spill] sm:$0xff] %v3721_v55  ;;  %v3725_v61 = vpop.f32.mrb[47].mxu0 }
 0x193   : > { %4588 = vst [vmem:[#allocation11_spill] sm:$0xff] %v3725_v61  ;;  %1030 = vmax.xlane.f32.xlu0 %v1029_v57  ;;  %v1032_v63 = vmax.f32 %v3721_v55, %v3725_v61 }
 0x195   : > { %1033 = vmax.xlane.f32.xlu1 %v1032_v63  ;;  %v3066_v63 = vld [vmem:[%s3781_s20] sm:$0xff]  }
 0x197   : > { %v3729_v3 = vpop.f32.mrb[48].mxu0 }
 0x198   : > { %4589 = vst [vmem:[#allocation12_spill] sm:$0xff] %v3729_v3  ;;  %v3731_v5 = vpop.f32.mrb[49].mxu0 }
 0x199   : > { %4590 = vst [vmem:[#allocation13_spill] sm:$0xff] %v3731_v5  ;;  %v3733_v9 = vpop.f32.mrb[50].mxu0  ;;  %v1035_v11 = vmax.f32 %v3729_v3, %v3731_v5 }
 0x19a   : > { %4591 = vst [vmem:[#allocation14_spill] sm:$0xff] %v3733_v9  ;;  %v3737_v15 = vpop.f32.mrb[51].mxu0 }
 0x19b   : > { %4592 = vst [vmem:[#allocation15_spill] sm:$0xff] %v3737_v15  ;;  %1036 = vmax.xlane.f32.xlu0 %v1035_v11  ;;  %v1038_v17 = vmax.f32 %v3733_v9, %v3737_v15  ;;  %v3068_v15 = vld [vmem:[%s3781_s20 + $0x8] sm:$0xff]   ;;  %v3070_v9 = vld [vmem:[%s3781_s20 + $0x10] sm:$0xff]  }
 0x19d   : > { %1039 = vmax.xlane.f32.xlu1 %v1038_v17  ;;  %v3065_v17 = vld [vmem:[%s3781_s20 + $0x40] sm:$0xff]  }
 0x19e   : > { %2936 = vmatprep.subr.bf16.mxu1 %v3065_v17  ;;  %2773 = vmatprep.subr.bf16.mxu0 %v3065_v17 }
 0x19f   : > { %v3741_v21 = vpop.f32.mrb[52].mxu0  ;;  %2944 = vmatpush3.bf16.msra.mxu1 %v3066_v63  ;;  %2774 = vmatpush3.bf16.msra.mxu0 %v3066_v63 }
 0x1a0   : > { %4593 = vst [vmem:[#allocation16_spill] sm:$0xff] %v3741_v21  ;;  %v3743_v23 = vpop.f32.mrb[53].mxu0 }
 0x1a1   : > { %4594 = vst [vmem:[#allocation17_spill] sm:$0xff] %v3743_v23  ;;  %v3745_v27 = vpop.f32.mrb[54].mxu0  ;;  %v1041_v29 = vmax.f32 %v3741_v21, %v3743_v23  ;;  %v3069_v21 = vld [vmem:[%s3781_s20 + $0x50] sm:$0xff]  }
 0x1a2   : > { %4595 = vst [vmem:[#allocation18_spill] sm:$0xff] %v3745_v27  ;;  %v3749_v33 = vpop.f32.mrb[55].mxu0 }
 0x1a3   : > { %4596 = vst [vmem:[#allocation19_spill] sm:$0xff] %v3749_v33  ;;  %1042 = vmax.xlane.f32.xlu0 %v1041_v29  ;;  %v1044_v35 = vmax.f32 %v3745_v27, %v3749_v33 }
 0x1a5   : > { %1045 = vmax.xlane.f32.xlu1 %v1044_v35  ;;  %v3067_v35 = vld [vmem:[%s3781_s20 + $0x48] sm:$0xff]  }
 0x1a6   : > { %2937 = vmatprep.subr.bf16.mxu1 %v3067_v35  ;;  %2775 = vmatprep.subr.bf16.mxu0 %v3067_v35 }
 0x1a7   : > { %v3753_v39 = vpop.f32.mrb[56].mxu0  ;;  %2945 = vmatpush3.bf16.msra.mxu1 %v3068_v15  ;;  %2776 = vmatpush3.bf16.msra.mxu0 %v3068_v15 }
 0x1a8   : > { %v3755_v45 = vpop.f32.mrb[57].mxu0  ;;  %2938 = vmatprep.subr.bf16.mxu1 %v3069_v21  ;;  %2777 = vmatprep.subr.bf16.mxu0 %v3069_v21 }
 0x1a9   : > { %v3757_v57 = vpop.f32.mrb[58].mxu0 }
 0x1aa   : > { %v3761_v11 = vpop.f32.mrb[59].mxu0 }
 0x1ab   : > { %2946 = vmatpush3.bf16.msra.mxu1 %v3070_v9  ;;  %2778 = vmatpush3.bf16.msra.mxu0 %v3070_v9 }
 0x1af   : > { %v3765_v23 = vpop.f32.mrb[60].mxu0 }
 0x1b0   : > { %v3767_v29 = vpop.f32.mrb[61].mxu0 }
 0x1b1   : > { %v3769_v33 = vpop.f32.mrb[62].mxu0 }
 0x1b2   : > { %v3773_v27 = vpop.f32.mrb[63].mxu0 }
 0x1d8   : > { %v977_v5 = vpop.xlane.xlu0 %976 }
 0x1d9   : > { %v1067_v3 = vsub.f32 %v3609_v52, %v977_v5  ;;  %v1068_v61 = vsub.f32 %v3611_v53, %v977_v5 }
 0x1db   : > { %v1139_v55 = vmul.f32 1.442695, %v1067_v3  ;;  %v1141_v17 = vmul.f32 1.442695, %v1068_v61 }
 0x1dc   : > { %v980_v51 = vpop.xlane.xlu0 %979 }
 0x1dd   : > { %3082 = vpow2.f32 %v1139_v55  ;;  %v1069_v63 = vsub.f32 %v3613_v54, %v980_v51  ;;  %v1070_v35 = vsub.f32 %v3617_v56, %v980_v51 }
 0x1de   : > { %3084 = vpow2.f32 %v1141_v17 }
 0x1df   : > { %v1143_v49 = vmul.f32 1.442695, %v1069_v63  ;;  %v1145_v15 = vmul.f32 1.442695, %v1070_v35 }
 0x1e0   : > { %v983_v43 = vpop.xlane.xlu1 %982 }
 0x1e1   : > { %3086 = vpow2.f32 %v1143_v49  ;;  %v1071_v9 = vsub.f32 %v3621_v58, %v983_v43  ;;  %v1072_v21 = vsub.f32 %v3623_v59, %v983_v43 }
 0x1e2   : > { %3088 = vpow2.f32 %v1145_v15 }
 0x1e3   : > { %v1147_v52 = vmul.f32 1.442695, %v1071_v9  ;;  %v1149_v53 = vmul.f32 1.442695, %v1072_v21 }
 0x1e4   : > { %v986_v3 = vpop.xlane.xlu1 %985 }
 0x1e5   : > { %3090 = vpow2.f32 %v1147_v52  ;;  %v1073_v55 = vsub.f32 %v3625_v60, %v986_v3  ;;  %v1074_v54 = vsub.f32 %v3629_v62, %v986_v3 }
 0x1e6   : > { %3092 = vpow2.f32 %v1149_v53  ;;  %v4597_v53 = vmax.f32 %v3753_v39, %v3755_v45 }
 0x1e7   : > { %v3797_v56 = vpop.eup %3082  ;;  %v1151_v51 = vmul.f32 1.442695, %v1073_v55  ;;  %v1153_v61 = vmul.f32 1.442695, %v1074_v54 }
 0x1e8   : > { %v3799_v5 = vpop.eup %3084  ;;  %v989_v49 = vpop.xlane.xlu0 %988 }
 0x1e9   : > { %3094 = vpow2.f32 %v1151_v51  ;;  %v1075_v58 = vsub.f32 %v3633_v0, %v989_v49  ;;  %v1076_v59 = vsub.f32 %v3635_v1, %v989_v49  ;;  %v1263_v43 = vadd.f32 %v3799_v5, %v3797_v56 }
 0x1ea   : > { %3096 = vpow2.f32 %v1153_v61  ;;  %v992_v60 = vpop.xlane.xlu1 %991 }
 0x1eb   : > { %v3805_v17 = vpop.eup %3086  ;;  %v1155_v62 = vmul.f32 1.442695, %v1075_v58  ;;  %v1157_v63 = vmul.f32 1.442695, %v1076_v59  ;;  %v1077_v35 = vsub.f32 %v3637_v2, %v992_v60  ;;  %v1078_v15 = vsub.f32 %v3641_v4, %v992_v60  ;;  %1264 = vadd.xlane.f32.xlu0 %v1263_v43 }
 0x1ec   : > { %v3809_v9 = vpop.eup %3088  ;;  %v4598_v60 = vmax.f32 %v3757_v57, %v3761_v11 }
 0x1ed   : > { %3098 = vpow2.f32 %v1155_v62  ;;  %v1159_v0 = vmul.f32 1.442695, %v1077_v35  ;;  %v1161_v21 = vmul.f32 1.442695, %v1078_v15  ;;  %v1266_v1 = vadd.f32 %v3809_v9, %v3805_v17 }
 0x1ee   : > { %3100 = vpow2.f32 %v1157_v63 }
 0x1ef   : > { %v3813_v52 = vpop.eup %3090  ;;  %3102 = vpow2.f32 %v1159_v0  ;;  %1267 = vadd.xlane.f32.xlu1 %v1266_v1  ;;  %1048 = vmax.xlane.f32.xlu0 %v4597_v53  ;;  %v3071_v0 = vld [vmem:[%s3781_s20 + $0x58] sm:$0xff]  }
 0x1f0   : > { %v3818_v2 = vpop.eup %3092  ;;  %3104 = vpow2.f32 %v1161_v21  ;;  %v995_v4 = vpop.xlane.xlu0 %994  ;;  %2939 = vmatprep.subr.bf16.mxu1 %v3071_v0  ;;  %2779 = vmatprep.subr.bf16.mxu0 %v3071_v0 }
 0x1f1   : > { %v1079_v3 = vsub.f32 %v3645_v6, %v995_v4  ;;  %v1080_v55 = vsub.f32 %v3647_v7, %v995_v4  ;;  %v1269_v54 = vadd.f32 %v3818_v2, %v3813_v52 }
 0x1f2   : > { %v998_v51 = vpop.xlane.xlu1 %997 }
 0x1f3   : > { %v3824_v61 = vpop.eup %3094  ;;  %v1163_v49 = vmul.f32 1.442695, %v1079_v3  ;;  %v1165_v58 = vmul.f32 1.442695, %v1080_v55  ;;  %v1081_v59 = vsub.f32 %v3649_v8, %v998_v51  ;;  %v1082_v43 = vsub.f32 %v3653_v10, %v998_v51  ;;  %1270 = vadd.xlane.f32.xlu0 %v1269_v54  ;;  %1051 = vmax.xlane.f32.xlu1 %v4598_v60  ;;  %v3072_v3 = vld [vmem:[%s3781_s20 + $0x18] sm:$0xff]   ;;  %v3073_v60 = vld [vmem:[%s3781_s20 + $0x60] sm:$0xff]  }
 0x1f4   : > { %v3831_v6 = vpop.eup %3096  ;;  %v4599_v8 = vmax.f32 %v3765_v23, %v3767_v29  ;;  %2947 = vmatpush3.bf16.msra.mxu1 %v3072_v3  ;;  %2780 = vmatpush3.bf16.msra.mxu0 %v3072_v3 }
 0x1f5   : > { %3106 = vpow2.f32 %v1163_v49  ;;  %v1167_v7 = vmul.f32 1.442695, %v1081_v59  ;;  %v1169_v62 = vmul.f32 1.442695, %v1082_v43  ;;  %v1272_v63 = vadd.f32 %v3831_v6, %v3824_v61  ;;  %2940 = vmatprep.subr.bf16.mxu1 %v3073_v60  ;;  %2781 = vmatprep.subr.bf16.mxu0 %v3073_v60 }
 0x1f6   : > { %3108 = vpow2.f32 %v1165_v58 }
 0x1f7   : > { %v3835_v35 = vpop.eup %3098  ;;  %3110 = vpow2.f32 %v1167_v7  ;;  %1273 = vadd.xlane.f32.xlu1 %v1272_v63  ;;  %1054 = vmax.xlane.f32.xlu0 %v4599_v8 }
 0x1f8   : > { %v3840_v10 = vpop.eup %3100  ;;  %3112 = vpow2.f32 %v1169_v62  ;;  %v1001_v15 = vpop.xlane.xlu0 %1000 }
 0x1f9   : > { %v3843_v21 = vpop.eup %3102  ;;  %v1083_v1 = vsub.f32 %v3657_v12, %v1001_v15  ;;  %v1084_v53 = vsub.f32 %v3659_v13, %v1001_v15  ;;  %v1275_v4 = vadd.f32 %v3840_v10, %v3835_v35  ;;  %v4600_v12 = vmax.f32 %v3769_v33, %v3773_v27 }
 0x1fa   : > { %v3850_v55 = vpop.eup %3104  ;;  %v1004_v54 = vpop.xlane.xlu1 %1003 }
 0x1fb   : > { %v1171_v51 = vmul.f32 1.442695, %v1083_v1  ;;  %v1173_v49 = vmul.f32 1.442695, %v1084_v53  ;;  %v1085_v58 = vsub.f32 %v3661_v14, %v1004_v54  ;;  %v1086_v59 = vsub.f32 %v3665_v16, %v1004_v54  ;;  %1276 = vadd.xlane.f32.xlu0 %v1275_v4  ;;  %1057 = vmax.xlane.f32.xlu1 %v4600_v12  ;;  %v3074_v14 = vld [vmem:[%s3781_s20 + $0x20] sm:$0xff]  }
 0x1fc   : > { %v965_v13 = vpop.xlane.xlu0 %964  ;;  %v1278_v43 = vadd.f32 %v3850_v55, %v3843_v21  ;;  %2948 = vmatpush3.bf16.msra.mxu1 %v3074_v14  ;;  %2782 = vmatpush3.bf16.msra.mxu0 %v3074_v14 }
 0x1fd   : > { %3114 = vpow2.f32 %v1171_v51  ;;  %v1175_v7 = vmul.f32 1.442695, %v1085_v58  ;;  %v1177_v62 = vmul.f32 1.442695, %v1086_v59  ;;  %v1059_v63 = vsub.f32 %v3585_v40, %v965_v13  ;;  %v3075_v58 = vld [vmem:[%s3781_s20 + $0x68] sm:$0xff]  }
 0x1fe   : > { %3116 = vpow2.f32 %v1173_v49  ;;  %v1060_v16 = vsub.f32 %v3587_v41, %v965_v13  ;;  %v968_v8 = vpop.xlane.xlu1 %967  ;;  %v3076_v13 = vld [vmem:[%s3781_s20 + $0x28] sm:$0xff]   ;;  %2941 = vmatprep.subr.bf16.mxu1 %v3075_v58  ;;  %2783 = vmatprep.subr.bf16.mxu0 %v3075_v58 }
 0x1ff   : > { %v3863_v15 = vpop.eup %3106  ;;  %3118 = vpow2.f32 %v1175_v7  ;;  %v1123_v0 = vmul.f32 1.442695, %v1059_v63  ;;  %v1061_v1 = vsub.f32 %v3589_v42, %v968_v8  ;;  %v1062_v53 = vsub.f32 %v3593_v44, %v968_v8  ;;  %1279 = vadd.xlane.f32.xlu1 %v1278_v43  ;;  %v3077_v8 = vld [vmem:[%s3781_s20 + $0x70] sm:$0xff]  }
 0x200   : > { %v3867_v4 = vpop.eup %3108  ;;  %3120 = vpow2.f32 %v1177_v62  ;;  %v1125_v40 = vmul.f32 1.442695, %v1060_v16  ;;  %v1007_v3 = vpop.xlane.xlu0 %1006  ;;  %2949 = vmatpush3.bf16.msra.mxu1 %v3076_v13  ;;  %2784 = vmatpush3.bf16.msra.mxu0 %v3076_v13 }
 0x201   : > { %v3869_v41 = vpop.eup %3110  ;;  %3122 = vpow2.f32 %v1123_v0  ;;  %v1127_v54 = vmul.f32 1.442695, %v1061_v1  ;;  %v1129_v51 = vmul.f32 1.442695, %v1062_v53  ;;  %v1087_v49 = vsub.f32 %v3669_v18, %v1007_v3  ;;  %v3078_v0 = vld [vmem:[%s3781_s20 + $0x30] sm:$0xff]   ;;  %2942 = vmatprep.subr.bf16.mxu1 %v3077_v8  ;;  %2785 = vmatprep.subr.bf16.mxu0 %v3077_v8 }
 0x202   : > { %v3873_v42 = vpop.eup %3112  ;;  %3124 = vpow2.f32 %v1125_v40  ;;  %v1088_v44 = vsub.f32 %v3671_v19, %v1007_v3  ;;  %v1010_v59 = vpop.xlane.xlu1 %1009  ;;  %v1281_v12 = vadd.f32 %v3867_v4, %v3863_v15 }
 0x203   : > { %3126 = vpow2.f32 %v1127_v54  ;;  %v1179_v43 = vmul.f32 1.442695, %v1087_v49  ;;  %v1089_v60 = vsub.f32 %v3673_v20, %v1010_v59  ;;  %v1090_v7 = vsub.f32 %v3677_v22, %v1010_v59  ;;  %v3079_v59 = vld [vmem:[%s3781_s20 + $0x78] sm:$0xff]  }
 0x204   : > { %3128 = vpow2.f32 %v1129_v51  ;;  %v1181_v18 = vmul.f32 1.442695, %v1088_v44  ;;  %1282 = vadd.xlane.f32.xlu0 %v1281_v12  ;;  %v971_v62 = vpop.xlane.xlu0 %970  ;;  %v1284_v19 = vadd.f32 %v3873_v42, %v3869_v41  ;;  %2950 = vmatpush3.bf16.msra.mxu1 %v3078_v0 }
 0x205   : > { %3130 = vpow2.f32 %v1179_v43  ;;  %v1183_v63 = vmul.f32 1.442695, %v1089_v60  ;;  %v1185_v14 = vmul.f32 1.442695, %v1090_v7  ;;  %v1063_v16 = vsub.f32 %v3597_v46, %v971_v62  ;;  %2786 = vmatpush3.bf16.msra.mxu0 %v3078_v0  ;;  %v3080_v43 = vld [vmem:[%s3781_s20 + $0x38] sm:$0xff]   ;;  %2943 = vmatprep.subr.bf16.mxu1 %v3079_v59 }
 0x206   : > { %3132 = vpow2.f32 %v1181_v18  ;;  %v1064_v20 = vsub.f32 %v3599_v47, %v971_v62  ;;  %1285 = vadd.xlane.f32.xlu1 %v1284_v19  ;;  %v974_v22 = vpop.xlane.xlu1 %973  ;;  %2787 = vmatprep.subr.bf16.mxu0 %v3079_v59 }
 0x207   : > { %v3887_v1 = vpop.eup %3114  ;;  %3134 = vpow2.f32 %v1183_v63  ;;  %v1131_v53 = vmul.f32 1.442695, %v1063_v16  ;;  %v1065_v40 = vsub.f32 %v3601_v48, %v974_v22  ;;  %v1066_v3 = vsub.f32 %v3605_v50, %v974_v22 }
 0x208   : > { %v3891_v46 = vpop.eup %3116  ;;  %3136 = vpow2.f32 %v1185_v14  ;;  %v1133_v54 = vmul.f32 1.442695, %v1064_v20  ;;  %v1013_v47 = vpop.xlane.xlu0 %1012  ;;  %2951 = vmatpush3.bf16.msra.mxu1 %v3080_v43 }
 0x209   : > { %v3893_v51 = vpop.eup %3118  ;;  %3138 = vpow2.f32 %v1131_v53  ;;  %v1135_v49 = vmul.f32 1.442695, %v1065_v40  ;;  %v1137_v58 = vmul.f32 1.442695, %v1066_v3  ;;  %v1091_v44 = vsub.f32 %v3681_v24, %v1013_v47  ;;  %2788 = vmatpush3.bf16.msra.mxu0 %v3080_v43 }
 0x20a   : > { %v3897_v48 = vpop.eup %3120  ;;  %3140 = vpow2.f32 %v1133_v54  ;;  %v1092_v50 = vsub.f32 %v3683_v25, %v1013_v47  ;;  %v1016_v12 = vpop.xlane.xlu1 %1015  ;;  %v1287_v13 = vadd.f32 %v3891_v46, %v3887_v1 }
 0x20b   : > { %v3903_v60 = vpop.eup %3122  ;;  %3142 = vpow2.f32 %v1135_v49  ;;  %v1187_v7 = vmul.f32 1.442695, %v1091_v44  ;;  %v1093_v18 = vsub.f32 %v3685_v26, %v1016_v12  ;;  %v1094_v24 = vsub.f32 %v3689_v28, %v1016_v12 }
 0x20c   : > { %v3907_v62 = vpop.eup %3124  ;;  %3144 = vpow2.f32 %v1137_v58  ;;  %v1189_v19 = vmul.f32 1.442695, %v1092_v50  ;;  %1288 = vadd.xlane.f32.xlu0 %v1287_v13  ;;  %v1290_v25 = vadd.f32 %v3897_v48, %v3893_v51 }
 0x20d   : > { %v3911_v63 = vpop.eup %3126  ;;  %3146 = vpow2.f32 %v1187_v7  ;;  %v1191_v14 = vmul.f32 1.442695, %v1093_v18  ;;  %v1193_v16 = vmul.f32 1.442695, %v1094_v24  ;;  %v1251_v26 = vadd.f32 %v3907_v62, %v3903_v60 }
 0x20e   : > { %v3915_v28 = vpop.eup %3128  ;;  %3148 = vpow2.f32 %v1189_v19  ;;  %1291 = vadd.xlane.f32.xlu1 %v1290_v25 }
 0x20f   : > { %v3917_v8 = vpop.eup %3130  ;;  %3150 = vpow2.f32 %v1191_v14  ;;  %v1254_v20 = vadd.f32 %v3915_v28, %v3911_v63 }
 0x210   : > { %v3921_v22 = vpop.eup %3132  ;;  %3152 = vpow2.f32 %v1193_v16  ;;  %1252 = vadd.xlane.f32.xlu0 %v1251_v26  ;;  %v1019_v0 = vpop.xlane.xlu0 %1018 }
 0x211   : > { %v3923_v53 = vpop.eup %3134  ;;  %v1095_v40 = vsub.f32 %v3693_v30, %v1019_v0  ;;  %v1096_v3 = vsub.f32 %v3695_v31, %v1019_v0  ;;  %v1293_v54 = vadd.f32 %v3921_v22, %v3917_v8 }
 0x212   : > { %v3929_v47 = vpop.eup %3136  ;;  %1255 = vadd.xlane.f32.xlu1 %v1254_v20  ;;  %v1022_v49 = vpop.xlane.xlu1 %1021 }
 0x213   : > { %v3931_v58 = vpop.eup %3138  ;;  %v1195_v44 = vmul.f32 1.442695, %v1095_v40  ;;  %v1197_v59 = vmul.f32 1.442695, %v1096_v3  ;;  %v1097_v50 = vsub.f32 %v3697_v32, %v1022_v49  ;;  %v1098_v12 = vsub.f32 %v3701_v34, %v1022_v49 }
 0x214   : > { %v3935_v13 = vpop.eup %3140  ;;  %1294 = vadd.xlane.f32.xlu0 %v1293_v54  ;;  %v1296_v30 = vadd.f32 %v3929_v47, %v3923_v53 }
 0x215   : > { %v3939_v31 = vpop.eup %3142  ;;  %3154 = vpow2.f32 %v1195_v44  ;;  %v1199_v43 = vmul.f32 1.442695, %v1097_v50  ;;  %v1201_v7 = vmul.f32 1.442695, %v1098_v12  ;;  %v1257_v18 = vadd.f32 %v3935_v13, %v3931_v58  ;;  %v4601_v44 = vld [vmem:[#allocation7_spill] sm:$0xff] }
 0x216   : > { %v3943_v24 = vpop.eup %3144  ;;  %3156 = vpow2.f32 %v1197_v59  ;;  %1297 = vadd.xlane.f32.xlu1 %v1296_v30 }
 0x217   : > { %v3945_v32 = vpop.eup %3146  ;;  %3158 = vpow2.f32 %v1199_v43  ;;  %v1260_v34 = vadd.f32 %v3943_v24, %v3939_v31 }
 0x218   : > { %v3949_v19 = vpop.eup %3148  ;;  %3160 = vpow2.f32 %v1201_v7  ;;  %1258 = vadd.xlane.f32.xlu0 %v1257_v18  ;;  %v1025_v25 = vpop.xlane.xlu0 %1024 }
 0x219   : > { %v3951_v14 = vpop.eup %3150  ;;  %v1099_v16 = vsub.f32 %v3705_v36, %v1025_v25  ;;  %v1100_v26 = vsub.f32 %v3707_v37, %v1025_v25  ;;  %v1299_v20 = vadd.f32 %v3949_v19, %v3945_v32 }
 0x21a   : > { %v3957_v0 = vpop.eup %3152  ;;  %1261 = vadd.xlane.f32.xlu1 %v1260_v34  ;;  %v1028_v40 = vpop.xlane.xlu1 %1027  ;;  %v4605_v34 = vld [vmem:[#allocation9_spill] sm:$0xff] }
 0x21b   : > { %v1203_v3 = vmul.f32 1.442695, %v1099_v16  ;;  %v1205_v54 = vmul.f32 1.442695, %v1100_v26  ;;  %v1101_v49 = vsub.f32 %v3709_v38, %v1028_v40  ;;  %v1102_v59 = vsub.f32 %v4601_v44, %v1028_v40  ;;  %v4604_v38 = vld [vmem:[#allocation8_spill] sm:$0xff]  ;;  %v4608_v44 = vld [vmem:[#allocation11_spill] sm:$0xff] }
 0x21c   : > { %1300 = vadd.xlane.f32.xlu0 %v1299_v20  ;;  %v1302_v50 = vadd.f32 %v3957_v0, %v3951_v14 }
 0x21d   : > { %3162 = vpow2.f32 %v1203_v3  ;;  %v1207_v36 = vmul.f32 1.442695, %v1101_v49  ;;  %v1209_v37 = vmul.f32 1.442695, %v1102_v59 }
 0x21e   : > { %3164 = vpow2.f32 %v1205_v54  ;;  %1303 = vadd.xlane.f32.xlu1 %v1302_v50  ;;  %v4607_v54 = vld [vmem:[#allocation10_spill] sm:$0xff] }
 0x21f   : > { %v3963_v12 = vpop.eup %3154  ;;  %3166 = vpow2.f32 %v1207_v36 }
 0x220   : > { %4602 = vst [vmem:[#allocation7_spill] sm:$0xff] %v3963_v12  ;;  %v3965_v30 = vpop.eup %3156  ;;  %3168 = vpow2.f32 %v1209_v37  ;;  %v1031_v43 = vpop.xlane.xlu0 %1030 }
 0x221   : > { %v3967_v7 = vpop.eup %3158  ;;  %v1103_v18 = vsub.f32 %v4604_v38, %v1031_v43  ;;  %v1104_v25 = vsub.f32 %v4605_v34, %v1031_v43  ;;  %v1305_v16 = vadd.f32 %v3965_v30, %v3963_v12 }
 0x222   : > { %4603 = vst [vmem:[#allocation20_spill] sm:$0xff] %v3967_v7  ;;  %v3973_v26 = vpop.eup %3160  ;;  %v1034_v20 = vpop.xlane.xlu1 %1033 }
 0x223   : > { %4606 = vst [vmem:[#allocation8_spill] sm:$0xff] %v3973_v26  ;;  %v1211_v40 = vmul.f32 1.442695, %v1103_v18  ;;  %v1213_v3 = vmul.f32 1.442695, %v1104_v25  ;;  %v1105_v49 = vsub.f32 %v4607_v54, %v1034_v20  ;;  %v1106_v59 = vsub.f32 %v4608_v44, %v1034_v20  ;;  %1306 = vadd.xlane.f32.xlu0 %v1305_v16  ;;  %v4612_v25 = vld [vmem:[#allocation12_spill] sm:$0xff] }
 0x224   : > { %v1308_v50 = vadd.f32 %v3973_v26, %v3967_v7  ;;  %v4613_v16 = vld [vmem:[#allocation13_spill] sm:$0xff]  ;;  %v4616_v7 = vld [vmem:[#allocation15_spill] sm:$0xff] }
 0x225   : > { %3170 = vpow2.f32 %v1211_v40  ;;  %v1215_v36 = vmul.f32 1.442695, %v1105_v49  ;;  %v1217_v37 = vmul.f32 1.442695, %v1106_v59 }
 0x226   : > { %3172 = vpow2.f32 %v1213_v3  ;;  %1309 = vadd.xlane.f32.xlu1 %v1308_v50  ;;  %v4615_v50 = vld [vmem:[#allocation14_spill] sm:$0xff] }
 0x227   : > { %v3979_v43 = vpop.eup %3162  ;;  %3174 = vpow2.f32 %v1215_v36 }
 0x228   : > { %4609 = vst [vmem:[#allocation9_spill] sm:$0xff] %v3979_v43  ;;  %v3981_v38 = vpop.eup %3164  ;;  %3176 = vpow2.f32 %v1217_v37  ;;  %v1037_v18 = vpop.xlane.xlu0 %1036 }
 0x229   : > { %4610 = vst [vmem:[#allocation10_spill] sm:$0xff] %v3981_v38  ;;  %v3983_v34 = vpop.eup %3166  ;;  %v1107_v20 = vsub.f32 %v4612_v25, %v1037_v18  ;;  %v1108_v54 = vsub.f32 %v4613_v16, %v1037_v18  ;;  %v1311_v40 = vadd.f32 %v3981_v38, %v3979_v43 }
 0x22a   : > { %4611 = vst [vmem:[#allocation11_spill] sm:$0xff] %v3983_v34  ;;  %v3989_v49 = vpop.eup %3168  ;;  %v1040_v3 = vpop.xlane.xlu1 %1039 }
 0x22b   : > { %4614 = vst [vmem:[#allocation12_spill] sm:$0xff] %v3989_v49  ;;  %v1219_v44 = vmul.f32 1.442695, %v1107_v20  ;;  %v1221_v59 = vmul.f32 1.442695, %v1108_v54  ;;  %v1109_v36 = vsub.f32 %v4615_v50, %v1040_v3  ;;  %v1110_v26 = vsub.f32 %v4616_v7, %v1040_v3  ;;  %1312 = vadd.xlane.f32.xlu0 %v1311_v40  ;;  %v4617_v50 = vld [vmem:[#allocation16_spill] sm:$0xff] }
 0x22c   : > { %v1314_v37 = vadd.f32 %v3989_v49, %v3983_v34  ;;  %v4618_v40 = vld [vmem:[#allocation17_spill] sm:$0xff]  ;;  %v4619_v34 = vld [vmem:[#allocation18_spill] sm:$0xff]  ;;  %v4620_v49 = vld [vmem:[#allocation19_spill] sm:$0xff] }
 0x22d   : > { %3178 = vpow2.f32 %v1219_v44  ;;  %v1223_v25 = vmul.f32 1.442695, %v1109_v36  ;;  %v1225_v12 = vmul.f32 1.442695, %v1110_v26 }
 0x22e   : > { %3180 = vpow2.f32 %v1221_v59  ;;  %1315 = vadd.xlane.f32.xlu1 %v1314_v37 }
 0x22f   : > { %v3995_v18 = vpop.eup %3170  ;;  %3182 = vpow2.f32 %v1223_v25 }
 0x230   : > { %v3997_v16 = vpop.eup %3172  ;;  %3184 = vpow2.f32 %v1225_v12  ;;  %v1043_v20 = vpop.xlane.xlu0 %1042 }
 0x231   : > { %v3999_v54 = vpop.eup %3174  ;;  %v1111_v7 = vsub.f32 %v4617_v50, %v1043_v20  ;;  %v1112_v3 = vsub.f32 %v4618_v40, %v1043_v20  ;;  %v1317_v44 = vadd.f32 %v3997_v16, %v3995_v18 }
 0x232   : > { %v4005_v36 = vpop.eup %3176  ;;  %v1046_v26 = vpop.xlane.xlu1 %1045 }
 0x233   : > { %v1227_v59 = vmul.f32 1.442695, %v1111_v7  ;;  %v1229_v37 = vmul.f32 1.442695, %v1112_v3  ;;  %v1113_v25 = vsub.f32 %v4619_v34, %v1046_v26  ;;  %v1114_v43 = vsub.f32 %v4620_v49, %v1046_v26  ;;  %1318 = vadd.xlane.f32.xlu0 %v1317_v44 }
 0x234   : > { %v1320_v12 = vadd.f32 %v4005_v36, %v3999_v54 }
 0x235   : > { %3186 = vpow2.f32 %v1227_v59  ;;  %v1231_v50 = vmul.f32 1.442695, %v1113_v25  ;;  %v1233_v38 = vmul.f32 1.442695, %v1114_v43 }
 0x236   : > { %3188 = vpow2.f32 %v1229_v37  ;;  %1321 = vadd.xlane.f32.xlu1 %v1320_v12 }
 0x237   : > { %v4011_v20 = vpop.eup %3178  ;;  %3190 = vpow2.f32 %v1231_v50 }
 0x238   : > { %v4013_v40 = vpop.eup %3180  ;;  %3192 = vpow2.f32 %v1233_v38 }
 0x239   : > { %v4015_v7 = vpop.eup %3182  ;;  %v1323_v34 = vadd.f32 %v4013_v40, %v4011_v20 }
 0x23a   : > { %4621 = vst [vmem:[#allocation13_spill] sm:$0xff] %v4015_v7  ;;  %v4019_v49 = vpop.eup %3184 }
 0x23b   : > { %4622 = vst [vmem:[#allocation14_spill] sm:$0xff] %v4019_v49  ;;  %1324 = vadd.xlane.f32.xlu0 %v1323_v34  ;;  %v1326_v3 = vadd.f32 %v4019_v49, %v4015_v7 }
 0x23d   : > { %1327 = vadd.xlane.f32.xlu1 %v1326_v3 }
 0x23f   : > { %v4023_v43 = vpop.eup %3186 }
 0x240   : > { %4623 = vst [vmem:[#allocation15_spill] sm:$0xff] %v4023_v43  ;;  %v4025_v44 = vpop.eup %3188 }
 0x241   : > { %4624 = vst [vmem:[#allocation16_spill] sm:$0xff] %v4025_v44  ;;  %v4027_v26 = vpop.eup %3190  ;;  %v1329_v38 = vadd.f32 %v4025_v44, %v4023_v43 }
 0x242   : > { %4625 = vst [vmem:[#allocation17_spill] sm:$0xff] %v4027_v26  ;;  %v4031_v59 = vpop.eup %3192 }
 0x243   : > { %4626 = vst [vmem:[#allocation18_spill] sm:$0xff] %v4031_v59  ;;  %1330 = vadd.xlane.f32.xlu0 %v1329_v38  ;;  %v1332_v37 = vadd.f32 %v4031_v59, %v4027_v26 }
 0x245   : > { %1333 = vadd.xlane.f32.xlu1 %v1332_v37 }
 0x278   : > { %v1265_v25 = vpop.xlane.xlu0 %1264 }
 0x279   : > { %3194 = vrcp.f32 %v1265_v25 }
 0x27c   : > { %v1268_v12 = vpop.xlane.xlu1 %1267  ;;  %v1049_v50 = vpop.xlane.xlu0 %1048 }
 0x27d   : > { %3196 = vrcp.f32 %v1268_v12  ;;  %v1115_v34 = vsub.f32 %v3753_v39, %v1049_v50  ;;  %v1116_v3 = vsub.f32 %v3755_v45, %v1049_v50 }
 0x27f   : > { %v1235_v7 = vmul.f32 1.442695, %v1115_v34  ;;  %v1237_v49 = vmul.f32 1.442695, %v1116_v3 }
 0x280   : > { %v1271_v43 = vpop.xlane.xlu0 %1270  ;;  %v1052_v44 = vpop.xlane.xlu1 %1051 }
 0x281   : > { %3198 = vpow2.f32 %v1235_v7  ;;  %v1117_v38 = vsub.f32 %v3757_v57, %v1052_v44  ;;  %v1118_v37 = vsub.f32 %v3761_v11, %v1052_v44 }
 0x282   : > { %3200 = vpow2.f32 %v1237_v49 }
 0x283   : > { %v3195_v25 = vpop.eup %3194  ;;  %3202 = vrcp.f32 %v1271_v43  ;;  %v1239_v12 = vmul.f32 1.442695, %v1117_v38  ;;  %v1241_v26 = vmul.f32 1.442695, %v1118_v37 }
 0x284   : > { %v1274_v39 = vpop.xlane.xlu1 %1273  ;;  %v1055_v59 = vpop.xlane.xlu0 %1054  ;;  %v1387_v45 = vmul.f32 %v3195_v25, %v3797_v56  ;;  %v1388_v50 = vmul.f32 %v3195_v25, %v3799_v5 }
 0x285   : > { %3204 = vpow2.f32 %v1239_v12  ;;  %v1119_v7 = vsub.f32 %v3765_v23, %v1055_v59  ;;  %v1120_v57 = vsub.f32 %v3767_v29, %v1055_v59 }
 0x286   : > { %3206 = vpow2.f32 %v1241_v26  ;;  %v2697_v11 = vpack.c.bf16 %v1388_v50, %v1387_v45 }
 0x287   : > { %v3197_v49 = vpop.eup %3196  ;;  %3208 = vrcp.f32 %v1274_v39  ;;  %v1243_v44 = vmul.f32 1.442695, %v1119_v7  ;;  %v1245_v34 = vmul.f32 1.442695, %v1120_v57 }
 0x288   : > { %v1277_v43 = vpop.xlane.xlu0 %1276  ;;  %v1058_v3 = vpop.xlane.xlu1 %1057  ;;  %v1389_v38 = vmul.f32 %v3197_v49, %v3805_v17  ;;  %v1390_v37 = vmul.f32 %v3197_v49, %v3809_v9  ;;  %1639 = vst [vmem:[%s4048_s12 + $0x20] sm:$0xff] %v2697_v11 }
 0x289   : > { %3210 = vpow2.f32 %v1243_v44  ;;  %v1121_v23 = vsub.f32 %v3769_v33, %v1058_v3  ;;  %v1122_v29 = vsub.f32 %v3773_v27, %v1058_v3 }
 0x28a   : > { %3212 = vpow2.f32 %v1245_v34  ;;  %v1448_v56 = vpack.c.bf16 %v1390_v37, %v1388_v50  ;;  %v2698_v5 = vpack.c.bf16 %v1390_v37, %v1389_v38  ;;  %v1447_v26 = vpack.c.bf16 %v1389_v38, %v1387_v45 }
 0x28b   : > { %v4053_v59 = vpop.eup %3198  ;;  %3214 = vrcp.f32 %v1277_v43  ;;  %v1247_v17 = vmul.f32 1.442695, %v1121_v23  ;;  %v1249_v25 = vmul.f32 1.442695, %v1122_v29 }
 0x28c   : > { %v4055_v9 = vpop.eup %3200  ;;  %1640 = vst [vmem:[%s4048_s12 + $0x28] sm:$0xff] %v2698_v5  ;;  %1811 = vmatprep.mubr.bf16.mxu1 %v1448_v56  ;;  %v1280_v12 = vpop.xlane.xlu1 %1279 }
 0x28d   : > { %v3203_v39 = vpop.eup %3202  ;;  %3216 = vpow2.f32 %v1247_v17  ;;  %1812 = vmatmul.mubr.bf16.vlgmr.msra.gmra.mrb[0].mxu1 %v1447_v26  ;;  %v1335_v27 = vadd.f32 %v4055_v9, %v4053_v59 }
 0x28e   : > { %3218 = vpow2.f32 %v1249_v25  ;;  %v1392_v33 = vmul.f32 %v3203_v39, %v3818_v2  ;;  %v1391_v45 = vmul.f32 %v3203_v39, %v3813_v52 }
 0x28f   : > { %v4062_v50 = vpop.eup %3204  ;;  %3220 = vrcp.f32 %v1280_v12  ;;  %1336 = vadd.xlane.f32.xlu0 %v1335_v27 }
 0x290   : > { %v4064_v7 = vpop.eup %3206  ;;  %v2699_v57 = vpack.c.bf16 %v1392_v33, %v1391_v45 }
 0x291   : > { %v3209_v11 = vpop.eup %3208  ;;  %v1283_v49 = vpop.xlane.xlu0 %1282  ;;  %v1338_v44 = vadd.f32 %v4064_v7, %v4062_v50 }
 0x292   : > { %3222 = vrcp.f32 %v1283_v49  ;;  %v1394_v34 = vmul.f32 %v3209_v11, %v3831_v6  ;;  %v1393_v2 = vmul.f32 %v3209_v11, %v3824_v61  ;;  %1641 = vst [vmem:[%s4048_s12 + $0x30] sm:$0xff] %v2699_v57 }
 0x293   : > { %v4071_v52 = vpop.eup %3210  ;;  %1339 = vadd.xlane.f32.xlu1 %v1338_v44  ;;  %v1286_v43 = vpop.xlane.xlu1 %1285 }
 0x294   : > { %v4073_v3 = vpop.eup %3212  ;;  %3224 = vrcp.f32 %v1286_v43  ;;  %v1450_v38 = vpack.c.bf16 %v1394_v34, %v1392_v33  ;;  %v1449_v37 = vpack.c.bf16 %v1393_v2, %v1391_v45  ;;  %v2700_v23 = vpack.c.bf16 %v1394_v34, %v1393_v2 }
 0x295   : > { %v3215_v29 = vpop.eup %3214  ;;  %v1341_v56 = vadd.f32 %v4073_v3, %v4071_v52 }
 0x296   : > { %1819 = vmatprep.mubr.bf16.mxu1 %v1450_v38  ;;  %1642 = vst [vmem:[%s4048_s12 + $0x38] sm:$0xff] %v2700_v23  ;;  %v1396_v61 = vmul.f32 %v3215_v29, %v3840_v10  ;;  %v1395_v6 = vmul.f32 %v3215_v29, %v3835_v35 }
 0x297   : > { %v4080_v5 = vpop.eup %3216  ;;  %1820 = vmatmul.mubr.bf16.gmra.mrb[4].mxu1 %v1449_v37  ;;  %1342 = vadd.xlane.f32.xlu0 %v1341_v56 }
 0x298   : > { %v4082_v26 = vpop.eup %3218  ;;  %v2701_v17 = vpack.c.bf16 %v1396_v61, %v1395_v6 }
 0x299   : > { %v3221_v25 = vpop.eup %3220  ;;  %v1289_v12 = vpop.xlane.xlu0 %1288  ;;  %v1344_v39 = vadd.f32 %v4082_v26, %v4080_v5 }
 0x29a   : > { %3226 = vrcp.f32 %v1289_v12  ;;  %v1398_v27 = vmul.f32 %v3221_v25, %v3850_v55  ;;  %v1397_v10 = vmul.f32 %v3221_v25, %v3843_v21  ;;  %1643 = vst [vmem:[%s4048_s12 + $0x40] sm:$0xff] %v2701_v17 }
 0x29b   : > { %1345 = vadd.xlane.f32.xlu1 %v1344_v39  ;;  %v1292_v35 = vpop.xlane.xlu1 %1291 }
 0x29c   : > { %v3223_v33 = vpop.eup %3222  ;;  %3228 = vrcp.f32 %v1292_v35  ;;  %v1452_v45 = vpack.c.bf16 %v1398_v27, %v1396_v61  ;;  %v1451_v57 = vpack.c.bf16 %v1397_v10, %v1395_v6  ;;  %v2702_v11 = vpack.c.bf16 %v1398_v27, %v1397_v10 }
 0x29d   : > { %v1253_v49 = vpop.xlane.xlu0 %1252  ;;  %v1400_v44 = vmul.f32 %v3223_v33, %v3867_v4  ;;  %v1399_v34 = vmul.f32 %v3223_v33, %v3863_v15 }
 0x29e   : > { %v3225_v2 = vpop.eup %3224  ;;  %3230 = vrcp.f32 %v1253_v49  ;;  %1827 = vmatprep.mubr.bf16.mxu1 %v1452_v45  ;;  %1644 = vst [vmem:[%s4048_s12 + $0x48] sm:$0xff] %v2702_v11 }
 0x29f   : > { %1828 = vmatmul.mubr.bf16.gmra.mrb[8].mxu1 %v1451_v57  ;;  %v1256_v21 = vpop.xlane.xlu1 %1255  ;;  %v1402_v55 = vmul.f32 %v3225_v2, %v3873_v42  ;;  %v1401_v43 = vmul.f32 %v3225_v2, %v3869_v41  ;;  %v2703_v38 = vpack.c.bf16 %v1400_v44, %v1399_v34 }
 0x2a0   : > { %3232 = vrcp.f32 %v1256_v21 }
 0x2a1   : > { %v1295_v37 = vpop.xlane.xlu0 %1294  ;;  %v1454_v23 = vpack.c.bf16 %v1402_v55, %v1400_v44  ;;  %v2704_v29 = vpack.c.bf16 %v1402_v55, %v1401_v43  ;;  %1645 = vst [vmem:[%s4048_s12 + $0x50] sm:$0xff] %v2703_v38  ;;  %v1453_v61 = vpack.c.bf16 %v1401_v43, %v1399_v34 }
 0x2a2   : > { %3234 = vrcp.f32 %v1295_v37 }
 0x2a3   : > { %1835 = vmatprep.mubr.bf16.mxu1 %v1454_v23  ;;  %v1298_v15 = vpop.xlane.xlu1 %1297  ;;  %1646 = vst [vmem:[%s4048_s12 + $0x58] sm:$0xff] %v2704_v29 }
 0x2a4   : > { %v3227_v4 = vpop.eup %3226  ;;  %3236 = vrcp.f32 %v1298_v15 }
 0x2a5   : > { %v1259_v56 = vpop.xlane.xlu0 %1258  ;;  %v1404_v6 = vmul.f32 %v3227_v4, %v3891_v46  ;;  %v1403_v42 = vmul.f32 %v3227_v4, %v3887_v1 }
 0x2a6   : > { %v3229_v41 = vpop.eup %3228  ;;  %3238 = vrcp.f32 %v1259_v56 }
 0x2a7   : > { %1836 = vmatmul.mubr.bf16.gmra.mrb[12].mxu1 %v1453_v61  ;;  %v1262_v17 = vpop.xlane.xlu1 %1261  ;;  %v1406_v25 = vmul.f32 %v3229_v41, %v3897_v48  ;;  %v1405_v12 = vmul.f32 %v3229_v41, %v3893_v51  ;;  %v2705_v39 = vpack.c.bf16 %v1404_v6, %v1403_v42 }
 0x2a8   : > { %v3231_v27 = vpop.eup %3230  ;;  %3240 = vrcp.f32 %v1262_v17 }
 0x2a9   : > { %v1301_v10 = vpop.xlane.xlu0 %1300  ;;  %v1456_v35 = vpack.c.bf16 %v1406_v25, %v1404_v6  ;;  %v2706_v33 = vpack.c.bf16 %v1406_v25, %v1405_v12  ;;  %1647 = vst [vmem:[%s4048_s12 + $0x60] sm:$0xff] %v2705_v39  ;;  %v1379_v46 = vmul.f32 %v3231_v27, %v3903_v60  ;;  %v1380_v1 = vmul.f32 %v3231_v27, %v3907_v62 }
 0x2aa   : > { %v3233_v45 = vpop.eup %3232  ;;  %3242 = vrcp.f32 %v1301_v10  ;;  %v1455_v49 = vpack.c.bf16 %v1405_v12, %v1403_v42 }
 0x2ab   : > { %1843 = vmatprep.mubr.bf16.mxu1 %v1456_v35  ;;  %v1304_v57 = vpop.xlane.xlu1 %1303  ;;  %1648 = vst [vmem:[%s4048_s12 + $0x68] sm:$0xff] %v2706_v33  ;;  %v1381_v51 = vmul.f32 %v3233_v45, %v3911_v63  ;;  %v1382_v48 = vmul.f32 %v3233_v45, %v3915_v28  ;;  %v2693_v44 = vpack.c.bf16 %v1380_v1, %v1379_v46  ;;  %v4627_v33 = vld [vmem:[#allocation7_spill] sm:$0xff] }
 0x2ac   : > { %v3235_v11 = vpop.eup %3234  ;;  %3244 = vrcp.f32 %v1304_v57 }
 0x2ad   : > { %v1444_v34 = vpack.c.bf16 %v1382_v48, %v1380_v1  ;;  %v2694_v2 = vpack.c.bf16 %v1382_v48, %v1381_v51  ;;  %v1443_v60 = vpack.c.bf16 %v1381_v51, %v1379_v46  ;;  %v1408_v21 = vmul.f32 %v3235_v11, %v3921_v22  ;;  %1635 = vst [vmem:[%s4048_s12] sm:$0xff] %v2693_v44  ;;  %v4628_v1 = vld [vmem:[#allocation8_spill] sm:$0xff] }
 0x2ae   : > { %v3237_v55 = vpop.eup %3236  ;;  %v1407_v62 = vmul.f32 %v3235_v11, %v3917_v8  ;;  %v4629_v51 = vld [vmem:[#allocation20_spill] sm:$0xff] }
 0x2af   : > { %1844 = vmatmul.mubr.bf16.gmra.mrb[16].mxu1 %v1455_v49  ;;  %1636 = vst [vmem:[%s4048_s12 + $0x8] sm:$0xff] %v2694_v2  ;;  %1795 = vmatprep.mubr.bf16.mxu0 %v1444_v34  ;;  %v1410_v63 = vmul.f32 %v3237_v55, %v3929_v47  ;;  %v1409_v28 = vmul.f32 %v3237_v55, %v3923_v53  ;;  %v4630_v2 = vld [vmem:[#allocation10_spill] sm:$0xff] }
 0x2b0   : > { %v3239_v43 = vpop.eup %3238  ;;  %1796 = vmatmul.mubr.bf16.vlgmr.msra.gmra.mrb[64].mxu0 %v1443_v60  ;;  %v1307_v38 = vpop.xlane.xlu0 %1306  ;;  %v2707_v37 = vpack.c.bf16 %v1408_v21, %v1407_v62 }
 0x2b1   : > { %3246 = vrcp.f32 %v1307_v38  ;;  %v1458_v23 = vpack.c.bf16 %v1410_v63, %v1408_v21  ;;  %v2708_v22 = vpack.c.bf16 %v1410_v63, %v1409_v28  ;;  %v1384_v15 = vmul.f32 %v3239_v43, %v3935_v13  ;;  %v4631_v21 = vld [vmem:[#allocation9_spill] sm:$0xff] }
 0x2b2   : > { %v3241_v29 = vpop.eup %3240  ;;  %1649 = vst [vmem:[%s4048_s12 + $0x70] sm:$0xff] %v2707_v37  ;;  %v1383_v8 = vmul.f32 %v3239_v43, %v3931_v58  ;;  %v1457_v61 = vpack.c.bf16 %v1409_v28, %v1407_v62  ;;  %v4632_v43 = vld [vmem:[#allocation12_spill] sm:$0xff]  ;;  %v4633_v37 = vld [vmem:[#allocation11_spill] sm:$0xff] }
 0x2b3   : > { %1851 = vmatprep.mubr.bf16.mxu1 %v1458_v23  ;;  %v1310_v4 = vpop.xlane.xlu1 %1309  ;;  %1650 = vst [vmem:[%s4048_s12 + $0x78] sm:$0xff] %v2708_v22  ;;  %v1386_v53 = vmul.f32 %v3241_v29, %v3943_v24  ;;  %v1385_v47 = vmul.f32 %v3241_v29, %v3939_v31 }
 0x2b4   : > { %v3243_v56 = vpop.eup %3242  ;;  %3248 = vrcp.f32 %v1310_v4  ;;  %v2695_v6 = vpack.c.bf16 %v1384_v15, %v1383_v8 }
 0x2b5   : > { %v1446_v42 = vpack.c.bf16 %v1386_v53, %v1384_v15  ;;  %v1445_v41 = vpack.c.bf16 %v1385_v47, %v1383_v8  ;;  %v2696_v17 = vpack.c.bf16 %v1386_v53, %v1385_v47  ;;  %v1412_v13 = vmul.f32 %v3243_v56, %v3949_v19 }
 0x2b6   : > { %v3245_v25 = vpop.eup %3244  ;;  %1637 = vst [vmem:[%s4048_s12 + $0x10] sm:$0xff] %v2695_v6  ;;  %v1411_v58 = vmul.f32 %v3243_v56, %v3945_v32 }
 0x2b7   : > { %1852 = vmatmul.mubr.bf16.gmra.mrb[20].mxu1 %v1457_v61  ;;  %1803 = vmatprep.mubr.bf16.mxu0 %v1446_v42  ;;  %1638 = vst [vmem:[%s4048_s12 + $0x18] sm:$0xff] %v2696_v17  ;;  %v1414_v31 = vmul.f32 %v3245_v25, %v3957_v0  ;;  %v1413_v24 = vmul.f32 %v3245_v25, %v3951_v14 }
 0x2b8   : > { %1804 = vmatmul.mubr.bf16.gmra.mrb[68].mxu0 %v1445_v41  ;;  %v1313_v12 = vpop.xlane.xlu0 %1312  ;;  %v2709_v39 = vpack.c.bf16 %v1412_v13, %v1411_v58 }
 0x2b9   : > { %3250 = vrcp.f32 %v1313_v12  ;;  %v1460_v27 = vpack.c.bf16 %v1414_v31, %v1412_v13  ;;  %v2710_v10 = vpack.c.bf16 %v1414_v31, %v1413_v24  ;;  %v1459_v46 = vpack.c.bf16 %v1413_v24, %v1411_v58  ;;  %v4634_v12 = vld [vmem:[#allocation14_spill] sm:$0xff] }
 0x2ba   : > { %1651 = vst [vmem:[%s4048_s12 + $0x80] sm:$0xff] %v2709_v39  ;;  %v4635_v39 = vld [vmem:[#allocation13_spill] sm:$0xff] }
 0x2bb   : > { %v3247_v19 = vpop.eup %3246  ;;  %1859 = vmatprep.mubr.bf16.mxu1 %v1460_v27  ;;  %v1316_v35 = vpop.xlane.xlu1 %1315  ;;  %1652 = vst [vmem:[%s4048_s12 + $0x88] sm:$0xff] %v2710_v10 }
 0x2bc   : > { %3252 = vrcp.f32 %v1316_v35  ;;  %v1416_v32 = vmul.f32 %v3247_v19, %v3965_v30  ;;  %v1415_v0 = vmul.f32 %v3247_v19, %v4627_v33  ;;  %v4636_v33 = vld [vmem:[#allocation16_spill] sm:$0xff] }
 0x2be   : > { %v3249_v14 = vpop.eup %3248  ;;  %v2711_v45 = vpack.c.bf16 %v1416_v32, %v1415_v0 }
 0x2bf   : > { %1860 = vmatmul.mubr.bf16.gmra.mrb[24].mxu1 %v1459_v46  ;;  %v1418_v57 = vmul.f32 %v3249_v14, %v4628_v1  ;;  %v1417_v48 = vmul.f32 %v3249_v14, %v4629_v51 }
 0x2c0   : > { %v1319_v11 = vpop.xlane.xlu0 %1318  ;;  %1653 = vst [vmem:[%s4048_s12 + $0x90] sm:$0xff] %v2711_v45  ;;  %v4638_v45 = vld [vmem:[#allocation18_spill] sm:$0xff] }
 0x2c1   : > { %3254 = vrcp.f32 %v1319_v11  ;;  %v1462_v49 = vpack.c.bf16 %v1418_v57, %v1416_v32  ;;  %v2712_v44 = vpack.c.bf16 %v1418_v57, %v1417_v48  ;;  %v1461_v62 = vpack.c.bf16 %v1417_v48, %v1415_v0  ;;  %v4639_v57 = vld [vmem:[#allocation17_spill] sm:$0xff] }
 0x2c3   : > { %v3251_v34 = vpop.eup %3250  ;;  %1867 = vmatprep.mubr.bf16.mxu1 %v1462_v49  ;;  %v1322_v30 = vpop.xlane.xlu1 %1321  ;;  %1654 = vst [vmem:[%s4048_s12 + $0x98] sm:$0xff] %v2712_v44 }
 0x2c4   : > { %3256 = vrcp.f32 %v1322_v30  ;;  %v1420_v60 = vmul.f32 %v3251_v34, %v4630_v2  ;;  %v1419_v55 = vmul.f32 %v3251_v34, %v4631_v21  ;;  %v3081_v34 = vld [vmem:[%s404_s16] sm:$0xff]  }
 0x2c5   : > { %2902 = vmatprep.subr.bf16.mxu1 %v3081_v34 }
 0x2c6   : > { %v3253_v63 = vpop.eup %3252  ;;  %v2713_v28 = vpack.c.bf16 %v1420_v60, %v1419_v55  ;;  %2903 = vmatpush3.bf16.msra.mxu1 %v3081_v34 }
 0x2c7   : > { %1868 = vmatmul.mubr.bf16.gmra.mrb[28].mxu1 %v1461_v62  ;;  %v1422_v38 = vmul.f32 %v3253_v63, %v4632_v43  ;;  %v1421_v23 = vmul.f32 %v3253_v63, %v4633_v37 }
 0x2c8   : > { %v1325_v22 = vpop.xlane.xlu0 %1324  ;;  %1655 = vst [vmem:[%s4048_s12 + $0xa0] sm:$0xff] %v2713_v28 }
 0x2c9   : > { %3258 = vrcp.f32 %v1325_v22  ;;  %v1464_v29 = vpack.c.bf16 %v1422_v38, %v1420_v60  ;;  %v2714_v15 = vpack.c.bf16 %v1422_v38, %v1421_v23  ;;  %v1463_v56 = vpack.c.bf16 %v1421_v23, %v1419_v55 }
 0x2ca   : > { %v1328_v8 = vpop.xlane.xlu1 %1327 }
 0x2cb   : > { %v3255_v4 = vpop.eup %3254  ;;  %1875 = vmatprep.mubr.bf16.mxu1 %v1464_v29  ;;  %3260 = vrcp.f32 %v1328_v8  ;;  %1656 = vst [vmem:[%s4048_s12 + $0xa8] sm:$0xff] %v2714_v15 }
 0x2cc   : > { %v1424_v53 = vmul.f32 %v3255_v4, %v3997_v16  ;;  %v1423_v47 = vmul.f32 %v3255_v4, %v3995_v18 }
 0x2ce   : > { %v3257_v61 = vpop.eup %3256  ;;  %v2715_v6 = vpack.c.bf16 %v1424_v53, %v1423_v47 }
 0x2cf   : > { %1876 = vmatmul.mubr.bf16.gmra.mrb[32].mxu1 %v1463_v56  ;;  %v1426_v42 = vmul.f32 %v3257_v61, %v4005_v36  ;;  %v1425_v41 = vmul.f32 %v3257_v61, %v3999_v54 }
 0x2d0   : > { %v1331_v17 = vpop.xlane.xlu0 %1330  ;;  %1657 = vst [vmem:[%s4048_s12 + $0xb0] sm:$0xff] %v2715_v6 }
 0x2d1   : > { %3262 = vrcp.f32 %v1331_v17  ;;  %v1466_v13 = vpack.c.bf16 %v1426_v42, %v1424_v53  ;;  %v2716_v25 = vpack.c.bf16 %v1426_v42, %v1425_v41  ;;  %v1465_v36 = vpack.c.bf16 %v1425_v41, %v1423_v47 }
 0x2d2   : > { %v1334_v58 = vpop.xlane.xlu1 %1333 }
 0x2d3   : > { %v3259_v31 = vpop.eup %3258  ;;  %1883 = vmatprep.mubr.bf16.mxu1 %v1466_v13  ;;  %3264 = vrcp.f32 %v1334_v58  ;;  %1658 = vst [vmem:[%s4048_s12 + $0xb8] sm:$0xff] %v2716_v25 }
 0x2d4   : > { %v1428_v18 = vmul.f32 %v3259_v31, %v4013_v40  ;;  %v1427_v16 = vmul.f32 %v3259_v31, %v4011_v20  ;;  %v4637_v20 = vld [vmem:[#allocation15_spill] sm:$0xff] }
 0x2d5   : > { %v3261_v24 = vpop.eup %3260 }
 0x2d6   : > { %v1430_v54 = vmul.f32 %v3261_v24, %v4634_v12  ;;  %v1429_v27 = vmul.f32 %v3261_v24, %v4635_v39  ;;  %v2717_v10 = vpack.c.bf16 %v1428_v18, %v1427_v16 }
 0x2d7   : > { %1884 = vmatmul.mubr.bf16.gmra.mrb[36].mxu1 %v1465_v36 }
 0x2d8   : > { %v1468_v19 = vpack.c.bf16 %v1430_v54, %v1428_v18  ;;  %v2718_v35 = vpack.c.bf16 %v1430_v54, %v1429_v27  ;;  %1659 = vst [vmem:[%s4048_s12 + $0xc0] sm:$0xff] %v2717_v10  ;;  %v1467_v14 = vpack.c.bf16 %v1429_v27, %v1427_v16 }
 0x2da   : > { %1891 = vmatprep.mubr.bf16.mxu1 %v1468_v19  ;;  %1660 = vst [vmem:[%s4048_s12 + $0xc8] sm:$0xff] %v2718_v35 }
 0x2db   : > { %v3263_v32 = vpop.eup %3262 }
 0x2dc   : > { %v1432_v40 = vmul.f32 %v3263_v32, %v4636_v33  ;;  %v1431_v0 = vmul.f32 %v3263_v32, %v4637_v20 }
 0x2dd   : > { %v3265_v46 = vpop.eup %3264 }
 0x2de   : > { %v1434_v1 = vmul.f32 %v3265_v46, %v4638_v45  ;;  %v1433_v51 = vmul.f32 %v3265_v46, %v4639_v57  ;;  %v2719_v48 = vpack.c.bf16 %v1432_v40, %v1431_v0 }
 0x2df   : > { %1892 = vmatmul.mubr.bf16.gmra.mrb[40].mxu1 %v1467_v14 }
 0x2e0   : > { %v1470_v11 = vpack.c.bf16 %v1434_v1, %v1432_v40  ;;  %v2720_v49 = vpack.c.bf16 %v1434_v1, %v1433_v51  ;;  %1661 = vst [vmem:[%s4048_s12 + $0xd0] sm:$0xff] %v2719_v48  ;;  %v1469_v44 = vpack.c.bf16 %v1433_v51, %v1431_v0 }
 0x2e2   : > { %1899 = vmatprep.mubr.bf16.mxu1 %v1470_v11  ;;  %1662 = vst [vmem:[%s4048_s12 + $0xd8] sm:$0xff] %v2720_v49 }
 0x2e7   : > { %1900 = vmatmul.mubr.bf16.gmra.mrb[44].mxu1 %v1469_v44 }
 0x31c   : > { %v1337_v30 = vpop.xlane.xlu0 %1336 }
 0x31d   : > { %3266 = vrcp.f32 %v1337_v30 }
 0x320   : > { %v1340_v2 = vpop.xlane.xlu1 %1339 }
 0x321   : > { %3268 = vrcp.f32 %v1340_v2 }
 0x324   : > { %v1343_v60 = vpop.xlane.xlu0 %1342 }
 0x325   : > { %3270 = vrcp.f32 %v1343_v60 }
 0x327   : > { %v3267_v21 = vpop.eup %3266 }
 0x328   : > { %v1346_v55 = vpop.xlane.xlu1 %1345  ;;  %v1436_v62 = vmul.f32 %v3267_v21, %v4055_v9  ;;  %v1435_v63 = vmul.f32 %v3267_v21, %v4053_v59 }
 0x329   : > { %3272 = vrcp.f32 %v1346_v55 }
 0x32a   : > { %v2721_v28 = vpack.c.bf16 %v1436_v62, %v1435_v63 }
 0x32b   : > { %v3269_v43 = vpop.eup %3268 }
 0x32c   : > { %v1438_v38 = vmul.f32 %v3269_v43, %v4064_v7  ;;  %v1437_v37 = vmul.f32 %v3269_v43, %v4062_v50  ;;  %1663 = vst [vmem:[%s4048_s12 + $0xe0] sm:$0xff] %v2721_v28 }
 0x32e   : > { %v1472_v23 = vpack.c.bf16 %v1438_v38, %v1436_v62  ;;  %v1471_v22 = vpack.c.bf16 %v1437_v37, %v1435_v63  ;;  %v2722_v29 = vpack.c.bf16 %v1438_v38, %v1437_v37 }
 0x32f   : > { %v3271_v15 = vpop.eup %3270 }
 0x330   : > { %1907 = vmatprep.mubr.bf16.mxu1 %v1472_v23  ;;  %1664 = vst [vmem:[%s4048_s12 + $0xe8] sm:$0xff] %v2722_v29  ;;  %v1440_v9 = vmul.f32 %v3271_v15, %v4073_v3  ;;  %v1439_v59 = vmul.f32 %v3271_v15, %v4071_v52 }
 0x331   : > { %1908 = vmatmul.mubr.bf16.gmra.mrb[48].mxu1 %v1471_v22 }
 0x332   : > { %v2723_v8 = vpack.c.bf16 %v1440_v9, %v1439_v59 }
 0x333   : > { %v3273_v4 = vpop.eup %3272 }
 0x334   : > { %v1442_v7 = vmul.f32 %v3273_v4, %v4082_v26  ;;  %v1441_v53 = vmul.f32 %v3273_v4, %v4080_v5  ;;  %1665 = vst [vmem:[%s4048_s12 + $0xf0] sm:$0xff] %v2723_v8 }
 0x336   : > { %v1474_v50 = vpack.c.bf16 %v1442_v7, %v1440_v9  ;;  %v1473_v47 = vpack.c.bf16 %v1441_v53, %v1439_v59  ;;  %v2724_v56 = vpack.c.bf16 %v1442_v7, %v1441_v53 }
 0x338   : > { %1915 = vmatprep.mubr.bf16.mxu1 %v1474_v50  ;;  %1666 = vst [vmem:[%s4048_s12 + $0xf8] sm:$0xff] %v2724_v56 }
 0x339   : > { %1916 = vmatmul.mubr.bf16.gmra.mrb[52].mxu1 %v1473_v47 }
 0x360   : > { %v2801_v61 = vpop.f32.mrb[0].mxu1 }
 0x361   : > { %v2802_v6 = vpop.f32.mrb[1].mxu1 }
 0x362   : > { %v2803_v42 = vadd.f32 %v2802_v6, %v2801_v61  ;;  %v2804_v3 = vpop.f32.mrb[2].mxu1 }
 0x363   : > { %v2805_v41 = vpop.f32.mrb[3].mxu1 }
 0x364   : > { %v2806_v52 = vadd.f32 %v2805_v41, %v2804_v3 }
 0x366   : > { %v1926_v17 = vpack.c.bf16 %v2806_v52, %v2803_v42 }
 0x36a   : > { %v2807_v13 = vpop.f32.mrb[4].mxu1 }
 0x36b   : > { %v2808_v25 = vpop.f32.mrb[5].mxu1 }
 0x36c   : > { %v2809_v58 = vadd.f32 %v2808_v25, %v2807_v13  ;;  %v2810_v26 = vpop.f32.mrb[6].mxu1 }
 0x36d   : > { %v2811_v31 = vpop.f32.mrb[7].mxu1 }
 0x36e   : > { %v2812_v5 = vadd.f32 %v2811_v31, %v2810_v26 }
 0x370   : > { %v1927_v18 = vpack.c.bf16 %v2812_v5, %v2809_v58 }
 0x372   : > { %v2813_v16 = vpop.f32.mrb[8].mxu1 }
 0x373   : > { %v2814_v24 = vpop.f32.mrb[9].mxu1 }
 0x374   : > { %v2815_v36 = vadd.f32 %v2814_v24, %v2813_v16  ;;  %v2816_v12 = vpop.f32.mrb[10].mxu1 }
 0x375   : > { %v2817_v54 = vpop.f32.mrb[11].mxu1 }
 0x376   : > { %v2818_v39 = vadd.f32 %v2817_v54, %v2816_v12 }
 0x378   : > { %v1928_v27 = vpack.c.bf16 %v2818_v39, %v2815_v36 }
 0x37a   : > { %v2819_v10 = vpop.f32.mrb[12].mxu1 }
 0x37b   : > { %v2820_v19 = vpop.f32.mrb[13].mxu1 }
 0x37c   : > { %v2821_v35 = vadd.f32 %v2820_v19, %v2819_v10  ;;  %v2822_v32 = vpop.f32.mrb[14].mxu1 }
 0x37d   : > { %v2823_v33 = vpop.f32.mrb[15].mxu1 }
 0x37e   : > { %v2824_v40 = vadd.f32 %v2823_v33, %v2822_v32 }
 0x380   : > { %v1929_v20 = vpack.c.bf16 %v2824_v40, %v2821_v35 }
 0x382   : > { %v2825_v0 = vpop.f32.mrb[16].mxu1 }
 0x383   : > { %v2826_v46 = vpop.f32.mrb[17].mxu1  ;;  %v2789_v14 = vpop.f32.mrb[64].mxu0 }
 0x384   : > { %v2827_v45 = vadd.f32 %v2826_v46, %v2825_v0  ;;  %v2828_v1 = vpop.f32.mrb[18].mxu1  ;;  %v2790_v57 = vpop.f32.mrb[65].mxu0 }
 0x385   : > { %v2791_v51 = vadd.f32 %v2790_v57, %v2789_v14  ;;  %v2829_v48 = vpop.f32.mrb[19].mxu1  ;;  %v2792_v11 = vpop.f32.mrb[66].mxu0 }
 0x386   : > { %v2830_v49 = vadd.f32 %v2829_v48, %v2828_v1  ;;  %v2793_v44 = vpop.f32.mrb[67].mxu0 }
 0x387   : > { %v2794_v34 = vadd.f32 %v2793_v44, %v2792_v11 }
 0x388   : > { %v1930_v30 = vpack.c.bf16 %v2830_v49, %v2827_v45 }
 0x389   : > { %v1924_v2 = vpack.c.bf16 %v2794_v34, %v2791_v51 }
 0x38a   : > { %v2831_v60 = vpop.f32.mrb[20].mxu1 }
 0x38b   : > { %v2832_v21 = vpop.f32.mrb[21].mxu1  ;;  %v2795_v55 = vpop.f32.mrb[68].mxu0  ;;  %2904 = vmatprep.mubr.msk.bf16.mxu1 %vm673_vm0, %v1924_v2 }
 0x38c   : > { %v2833_v62 = vadd.f32 %v2832_v21, %v2831_v60  ;;  %v2834_v63 = vpop.f32.mrb[22].mxu1  ;;  %v2796_v28 = vpop.f32.mrb[69].mxu0 }
 0x38d   : > { %v2797_v43 = vadd.f32 %v2796_v28, %v2795_v55  ;;  %v2835_v38 = vpop.f32.mrb[23].mxu1  ;;  %v2798_v37 = vpop.f32.mrb[70].mxu0 }
 0x38e   : > { %v2836_v23 = vadd.f32 %v2835_v38, %v2834_v63  ;;  %v2799_v22 = vpop.f32.mrb[71].mxu0 }
 0x38f   : > { %v2800_v29 = vadd.f32 %v2799_v22, %v2798_v37 }
 0x390   : > { %v1931_v15 = vpack.c.bf16 %v2836_v23, %v2833_v62 }
 0x391   : > { %v1925_v9 = vpack.c.bf16 %v2800_v29, %v2797_v43 }
 0x392   : > { %v2837_v59 = vpop.f32.mrb[24].mxu1 }
 0x393   : > { %v2838_v8 = vpop.f32.mrb[25].mxu1  ;;  %2905 = vmatmul.mubr.msk.bf16.vlgmr.msra.gmra.mrb[56].mxu1 %vm673_vm0, %v1925_v9 }
 0x394   : > { %v2839_v4 = vadd.f32 %v2838_v8, %v2837_v59  ;;  %v2840_v7 = vpop.f32.mrb[26].mxu1  ;;  %2908 = vmatprep.mubr.msk.bf16.mxu1 %vm673_vm0, %v1926_v17 }
 0x395   : > { %v2841_v53 = vpop.f32.mrb[27].mxu1 }
 0x396   : > { %v2842_v50 = vadd.f32 %v2841_v53, %v2840_v7 }
 0x398   : > { %v1932_v47 = vpack.c.bf16 %v2842_v50, %v2839_v4 }
 0x39a   : > { %v2843_v56 = vpop.f32.mrb[28].mxu1 }
 0x39b   : > { %v2844_v61 = vpop.f32.mrb[29].mxu1  ;;  %2909 = vmatmul.mubr.msk.bf16.gmra.mrb[60].mxu1 %vm673_vm0, %v1927_v18 }
 0x39c   : > { %v2845_v6 = vadd.f32 %v2844_v61, %v2843_v56  ;;  %v2846_v42 = vpop.f32.mrb[30].mxu1  ;;  %2912 = vmatprep.mubr.msk.bf16.mxu1 %vm673_vm0, %v1928_v27 }
 0x39d   : > { %v2847_v3 = vpop.f32.mrb[31].mxu1 }
 0x39e   : > { %v2848_v41 = vadd.f32 %v2847_v3, %v2846_v42 }
 0x3a0   : > { %v1933_v52 = vpack.c.bf16 %v2848_v41, %v2845_v6 }
 0x3a2   : > { %v2849_v13 = vpop.f32.mrb[32].mxu1 }
 0x3a3   : > { %v2850_v25 = vpop.f32.mrb[33].mxu1  ;;  %2913 = vmatmul.mubr.msk.bf16.gmra.mrb[64].mxu1 %vm673_vm0, %v1929_v20 }
 0x3a4   : > { %v2851_v58 = vadd.f32 %v2850_v25, %v2849_v13  ;;  %v2852_v17 = vpop.f32.mrb[34].mxu1  ;;  %2916 = vmatprep.mubr.msk.bf16.mxu1 %vm673_vm0, %v1930_v30 }
 0x3a5   : > { %v2853_v26 = vpop.f32.mrb[35].mxu1 }
 0x3a6   : > { %v2854_v31 = vadd.f32 %v2853_v26, %v2852_v17 }
 0x3a8   : > { %v1934_v5 = vpack.c.bf16 %v2854_v31, %v2851_v58 }
 0x3aa   : > { %v2855_v16 = vpop.f32.mrb[36].mxu1 }
 0x3ab   : > { %v2856_v18 = vpop.f32.mrb[37].mxu1  ;;  %2917 = vmatmul.mubr.msk.bf16.gmra.mrb[68].mxu1 %vm673_vm0, %v1931_v15 }
 0x3ac   : > { %v2857_v24 = vadd.f32 %v2856_v18, %v2855_v16  ;;  %v2858_v36 = vpop.f32.mrb[38].mxu1  ;;  %2920 = vmatprep.mubr.msk.bf16.mxu1 %vm673_vm0, %v1932_v47 }
 0x3ad   : > { %v2859_v12 = vpop.f32.mrb[39].mxu1 }
 0x3ae   : > { %v2860_v54 = vadd.f32 %v2859_v12, %v2858_v36  ;;  %v2683_v36 = vld [vmem:[%s4549_s4] ss:$0 sm:$0xff] (!%p2682_p0) }
 0x3b0   : > { %v1935_v39 = vpack.c.bf16 %v2860_v54, %v2857_v24 }
 0x3b2   : > { %v2861_v27 = vpop.f32.mrb[40].mxu1 }
 0x3b3   : > { %v2862_v10 = vpop.f32.mrb[41].mxu1  ;;  %2921 = vmatmul.mubr.msk.bf16.gmra.mrb[72].mxu1 %vm673_vm0, %v1933_v52 }
 0x3b4   : > { %v2863_v19 = vadd.f32 %v2862_v10, %v2861_v27  ;;  %v2864_v35 = vpop.f32.mrb[42].mxu1  ;;  %2924 = vmatprep.mubr.msk.bf16.mxu1 %vm673_vm0, %v1934_v5 }
 0x3b5   : > { %v2865_v32 = vpop.f32.mrb[43].mxu1 }
 0x3b6   : > { %v2866_v33 = vadd.f32 %v2865_v32, %v2864_v35 }
 0x3b8   : > { %v1936_v40 = vpack.c.bf16 %v2866_v33, %v2863_v19 }
 0x3ba   : > { %v2867_v20 = vpop.f32.mrb[44].mxu1 }
 0x3bb   : > { %v2868_v0 = vpop.f32.mrb[45].mxu1  ;;  %2925 = vmatmul.mubr.msk.bf16.gmra.mrb[76].mxu1 %vm673_vm0, %v1935_v39 }
 0x3bc   : > { %v2869_v46 = vadd.f32 %v2868_v0, %v2867_v20  ;;  %v2870_v14 = vpop.f32.mrb[46].mxu1  ;;  %2928 = vmatprep.mubr.msk.bf16.mxu1 %vm673_vm0, %v1936_v40 }
 0x3bd   : > { %v2871_v45 = vpop.f32.mrb[47].mxu1 }
 0x3be   : > { %v2872_v1 = vadd.f32 %v2871_v45, %v2870_v14 }
 0x3c0   : > { %v1937_v57 = vpack.c.bf16 %v2872_v1, %v2869_v46 }
 0x3c3   : > { %2929 = vmatmul.mubr.msk.bf16.gmra.mrb[80].mxu1 %vm673_vm0, %v1937_v57 }
 0x404   : > { %v2873_v51 = vpop.f32.mrb[48].mxu1 }
 0x405   : > { %v2874_v48 = vpop.f32.mrb[49].mxu1 }
 0x406   : > { %v2875_v11 = vadd.f32 %v2874_v48, %v2873_v51  ;;  %v2876_v49 = vpop.f32.mrb[50].mxu1 }
 0x407   : > { %v2877_v44 = vpop.f32.mrb[51].mxu1 }
 0x408   : > { %v2878_v34 = vadd.f32 %v2877_v44, %v2876_v49 }
 0x40a   : > { %v1938_v30 = vpack.c.bf16 %v2878_v34, %v2875_v11 }
 0x40c   : > { %v2879_v2 = vpop.f32.mrb[52].mxu1  ;;  %2932 = vmatprep.mubr.msk.bf16.mxu1 %vm673_vm0, %v1938_v30 }
 0x40d   : > { %v2880_v60 = vpop.f32.mrb[53].mxu1 }
 0x40e   : > { %v2881_v21 = vadd.f32 %v2880_v60, %v2879_v2  ;;  %v2882_v55 = vpop.f32.mrb[54].mxu1 }
 0x40f   : > { %v2883_v62 = vpop.f32.mrb[55].mxu1 }
 0x410   : > { %v2884_v63 = vadd.f32 %v2883_v62, %v2882_v55 }
 0x412   : > { %v1939_v28 = vpack.c.bf16 %v2884_v63, %v2881_v21 }
 0x414   : > { %2933 = vmatmul.mubr.msk.bf16.gmra.mrb[84].mxu1 %vm673_vm0, %v1939_v28 }
 0x466   : > { %v4188_v43 = vpop.f32.mrb[56].mxu1 }
 0x467   : > { %v4190_v38 = vpop.f32.mrb[57].mxu1  ;;  %v2170_v39 = vadd.f32 (!%p2682_p0), %v4188_v43, %v2683_v36 }
 0x468   : > { %v4192_v37 = vpop.f32.mrb[58].mxu1  ;;  %v2168_v12 = vadd.f32 (!%p2682_p0), %v2683_v36, %v4190_v38 }
 0x469   : > { %v4194_v23 = vpop.f32.mrb[59].mxu1  ;;  %v2171_v27 = vadd.f32 (!%p2682_p0), %v4192_v37, %v2683_v36  ;;  %2203 = vst.msk [vmem:[%s3489_s9 + $0x10] sm:$0xff] (!%p2682_p0), %vm2200_vm1, %v2170_v39 }
 0x46a   : > { %v2169_v54 = vadd.f32 (!%p2682_p0), %v2683_v36, %v4194_v23  ;;  %2201 = vst.msk [vmem:[%s3489_s9] sm:$0xff] (!%p2682_p0), %vm2200_vm1, %v2168_v12 }
 0x46b   : > { %2204 = vst.msk [vmem:[%s3489_s9 + $0x18] sm:$0xff] (!%p2682_p0), %vm2200_vm1, %v2171_v27 }
 0x46c   : > { %2202 = vst.msk [vmem:[%s3489_s9 + $0x8] sm:$0xff] (!%p2682_p0), %vm2200_vm1, %v2169_v54 }
 0x46e   : > { %v4196_v22 = vpop.f32.mrb[60].mxu1 }
 0x46f   : > { %v4198_v29 = vpop.f32.mrb[61].mxu1  ;;  %v2174_v35 = vadd.f32 (!%p2682_p0), %v4196_v22, %v2683_v36 }
 0x470   : > { %v4200_v15 = vpop.f32.mrb[62].mxu1  ;;  %v2172_v10 = vadd.f32 (!%p2682_p0), %v2683_v36, %v4198_v29 }
 0x471   : > { %v4202_v9 = vpop.f32.mrb[63].mxu1  ;;  %v2175_v32 = vadd.f32 (!%p2682_p0), %v4200_v15, %v2683_v36  ;;  %2207 = vst.msk [vmem:[%s3489_s9 + $0x30] sm:$0xff] (!%p2682_p0), %vm2200_vm1, %v2174_v35 }
 0x472   : > { %v2173_v19 = vadd.f32 (!%p2682_p0), %v2683_v36, %v4202_v9  ;;  %2205 = vst.msk [vmem:[%s3489_s9 + $0x20] sm:$0xff] (!%p2682_p0), %vm2200_vm1, %v2172_v10 }
 0x473   : > { %2208 = vst.msk [vmem:[%s3489_s9 + $0x38] sm:$0xff] (!%p2682_p0), %vm2200_vm1, %v2175_v32 }
 0x474   : > { %2206 = vst.msk [vmem:[%s3489_s9 + $0x28] sm:$0xff] (!%p2682_p0), %vm2200_vm1, %v2173_v19 }
 0x476   : > { %v4204_v59 = vpop.f32.mrb[64].mxu1 }
 0x477   : > { %v4206_v8 = vpop.f32.mrb[65].mxu1  ;;  %v2178_v20 = vadd.f32 (!%p2682_p0), %v4204_v59, %v2683_v36 }
 0x478   : > { %v4208_v4 = vpop.f32.mrb[66].mxu1  ;;  %v2176_v33 = vadd.f32 (!%p2682_p0), %v2683_v36, %v4206_v8 }
 0x479   : > { %v4210_v7 = vpop.f32.mrb[67].mxu1  ;;  %v2179_v0 = vadd.f32 (!%p2682_p0), %v4208_v4, %v2683_v36  ;;  %2211 = vst.msk [vmem:[%s3489_s9 + $0x50] sm:$0xff] (!%p2682_p0), %vm2200_vm1, %v2178_v20 }
 0x47a   : > { %v2177_v40 = vadd.f32 (!%p2682_p0), %v2683_v36, %v4210_v7  ;;  %2209 = vst.msk [vmem:[%s3489_s9 + $0x40] sm:$0xff] (!%p2682_p0), %vm2200_vm1, %v2176_v33 }
 0x47b   : > { %2212 = vst.msk [vmem:[%s3489_s9 + $0x58] sm:$0xff] (!%p2682_p0), %vm2200_vm1, %v2179_v0 }
 0x47c   : > { %2210 = vst.msk [vmem:[%s3489_s9 + $0x48] sm:$0xff] (!%p2682_p0), %vm2200_vm1, %v2177_v40 }
 0x47e   : > { %v4212_v53 = vpop.f32.mrb[68].mxu1 }
 0x47f   : > { %v4214_v50 = vpop.f32.mrb[69].mxu1  ;;  %v2182_v45 = vadd.f32 (!%p2682_p0), %v4212_v53, %v2683_v36 }
 0x480   : > { %v4216_v47 = vpop.f32.mrb[70].mxu1  ;;  %v2180_v46 = vadd.f32 (!%p2682_p0), %v2683_v36, %v4214_v50 }
 0x481   : > { %v4218_v56 = vpop.f32.mrb[71].mxu1  ;;  %v2183_v1 = vadd.f32 (!%p2682_p0), %v4216_v47, %v2683_v36  ;;  %2215 = vst.msk [vmem:[%s3489_s9 + $0x70] sm:$0xff] (!%p2682_p0), %vm2200_vm1, %v2182_v45 }
 0x482   : > { %v2181_v14 = vadd.f32 (!%p2682_p0), %v2683_v36, %v4218_v56  ;;  %2213 = vst.msk [vmem:[%s3489_s9 + $0x60] sm:$0xff] (!%p2682_p0), %vm2200_vm1, %v2180_v46 }
 0x483   : > { %2216 = vst.msk [vmem:[%s3489_s9 + $0x78] sm:$0xff] (!%p2682_p0), %vm2200_vm1, %v2183_v1 }
 0x484   : > { %2214 = vst.msk [vmem:[%s3489_s9 + $0x68] sm:$0xff] (!%p2682_p0), %vm2200_vm1, %v2181_v14 }
 0x486   : > { %v4220_v61 = vpop.f32.mrb[72].mxu1 }
 0x487   : > { %v4222_v6 = vpop.f32.mrb[73].mxu1  ;;  %v2186_v48 = vadd.f32 (!%p2682_p0), %v4220_v61, %v2683_v36 }
 0x488   : > { %v4224_v42 = vpop.f32.mrb[74].mxu1  ;;  %v2184_v57 = vadd.f32 (!%p2682_p0), %v2683_v36, %v4222_v6 }
 0x489   : > { %v4226_v3 = vpop.f32.mrb[75].mxu1  ;;  %v2187_v11 = vadd.f32 (!%p2682_p0), %v4224_v42, %v2683_v36  ;;  %2219 = vst.msk [vmem:[%s3489_s9 + $0x90] sm:$0xff] (!%p2682_p0), %vm2200_vm1, %v2186_v48 }
 0x48a   : > { %v2185_v51 = vadd.f32 (!%p2682_p0), %v2683_v36, %v4226_v3  ;;  %2217 = vst.msk [vmem:[%s3489_s9 + $0x80] sm:$0xff] (!%p2682_p0), %vm2200_vm1, %v2184_v57 }
 0x48b   : > { %2220 = vst.msk [vmem:[%s3489_s9 + $0x98] sm:$0xff] (!%p2682_p0), %vm2200_vm1, %v2187_v11 }
 0x48c   : > { %2218 = vst.msk [vmem:[%s3489_s9 + $0x88] sm:$0xff] (!%p2682_p0), %vm2200_vm1, %v2185_v51 }
 0x48e   : > { %v4228_v41 = vpop.f32.mrb[76].mxu1 }
 0x48f   : > { %v4230_v52 = vpop.f32.mrb[77].mxu1  ;;  %v2190_v34 = vadd.f32 (!%p2682_p0), %v4228_v41, %v2683_v36 }
 0x490   : > { %v4232_v13 = vpop.f32.mrb[78].mxu1  ;;  %v2188_v49 = vadd.f32 (!%p2682_p0), %v2683_v36, %v4230_v52 }
 0x491   : > { %v4234_v25 = vpop.f32.mrb[79].mxu1  ;;  %v2191_v30 = vadd.f32 (!%p2682_p0), %v4232_v13, %v2683_v36  ;;  %2223 = vst.msk [vmem:[%s3489_s9 + $0xb0] sm:$0xff] (!%p2682_p0), %vm2200_vm1, %v2190_v34 }
 0x492   : > { %v2189_v44 = vadd.f32 (!%p2682_p0), %v2683_v36, %v4234_v25  ;;  %2221 = vst.msk [vmem:[%s3489_s9 + $0xa0] sm:$0xff] (!%p2682_p0), %vm2200_vm1, %v2188_v49 }
 0x493   : > { %2224 = vst.msk [vmem:[%s3489_s9 + $0xb8] sm:$0xff] (!%p2682_p0), %vm2200_vm1, %v2191_v30 }
 0x494   : > { %2222 = vst.msk [vmem:[%s3489_s9 + $0xa8] sm:$0xff] (!%p2682_p0), %vm2200_vm1, %v2189_v44 }
 0x496   : > { %v4236_v58 = vpop.f32.mrb[80].mxu1 }
 0x497   : > { %v4238_v17 = vpop.f32.mrb[81].mxu1  ;;  %v2194_v21 = vadd.f32 (!%p2682_p0), %v4236_v58, %v2683_v36 }
 0x498   : > { %v4240_v26 = vpop.f32.mrb[82].mxu1  ;;  %v2192_v2 = vadd.f32 (!%p2682_p0), %v2683_v36, %v4238_v17 }
 0x499   : > { %v4242_v31 = vpop.f32.mrb[83].mxu1  ;;  %v2195_v55 = vadd.f32 (!%p2682_p0), %v4240_v26, %v2683_v36  ;;  %2227 = vst.msk [vmem:[%s3489_s9 + $0xd0] sm:$0xff] (!%p2682_p0), %vm2200_vm1, %v2194_v21 }
 0x49a   : > { %v2193_v60 = vadd.f32 (!%p2682_p0), %v2683_v36, %v4242_v31  ;;  %2225 = vst.msk [vmem:[%s3489_s9 + $0xc0] sm:$0xff] (!%p2682_p0), %vm2200_vm1, %v2192_v2 }
 0x49b   : > { %2228 = vst.msk [vmem:[%s3489_s9 + $0xd8] sm:$0xff] (!%p2682_p0), %vm2200_vm1, %v2195_v55 }
 0x49c   : > { %2226 = vst.msk [vmem:[%s3489_s9 + $0xc8] sm:$0xff] (!%p2682_p0), %vm2200_vm1, %v2193_v60 }
 0x4e4   : > { %2160 = sbr.rel (%p2682_p0) target bundleno = 1262 (0x4ee), region = 44 }
 0x4e7   : > { %v4244_v5 = vpop.f32.mrb[84].mxu1 }
 0x4e8   : > { %v4246_v16 = vpop.f32.mrb[85].mxu1  ;;  %v2198_v28 = vadd.f32 (!%p2682_p0), %v4244_v5, %v2683_v36 }
 0x4e9   : > { %v4248_v18 = vpop.f32.mrb[86].mxu1  ;;  %v2196_v62 = vadd.f32 (!%p2682_p0), %v2683_v36, %v4246_v16 }
 0x4ea   : > { %v4250_v24 = vpop.f32.mrb[87].mxu1  ;;  %v2199_v12 = vadd.f32 (!%p2682_p0), %v4248_v18, %v2683_v36  ;;  %2231 = vst.msk [vmem:[%s3489_s9 + $0xf0] sm:$0xff] (!%p2682_p0), %vm2200_vm1, %v2198_v28 }
 0x4eb   : > { %v2197_v63 = vadd.f32 %v2683_v36, %v4250_v24  ;;  %2229 = vst.msk [vmem:[%s3489_s9 + $0xe0] sm:$0xff] %vm2200_vm1, %v2196_v62 }
 0x4ec   : > { %2232 = vst.msk [vmem:[%s3489_s9 + $0xf8] sm:$0xff] %vm2200_vm1, %v2199_v12 }
 0x4ed   : > { %2230 = vst.msk [vmem:[%s3489_s9 + $0xe8] sm:$0xff] %vm2200_vm1, %v2197_v63 }
 0x4ee PF: > { %p2684_p1 = scmp.le.s32.totalorder %s3352_s24, 0 }
 0x4ef   : > { %v2237_v36 = vld [vmem:[%s3489_s9] sm:$0xff] (!%p2684_p1)  ;;  %vm2301_vm2 = vcmask (!%p2684_p1), 523264   ;;  %v2238_v54 = vld [vmem:[%s3489_s9 + $0x8] sm:$0xff] (!%p2684_p1)  ;;  %v2239_v39 = vld [vmem:[%s3489_s9 + $0x10] sm:$0xff] (!%p2684_p1) }
 0x4f0   : > { %2236 = sbr.rel (%p2684_p1) target bundleno = 1282 (0x502), region = 48  ;;  %v2269_v27 = vadd.f32 (!%p2684_p1), %v2237_v36, %v4190_v38  ;;  %v2270_v10 = vadd.f32 (!%p2684_p1), %v2238_v54, %v4194_v23  ;;  %v2271_v19 = vadd.f32 (!%p2684_p1), %v4188_v43, %v2239_v39  ;;  %v2240_v35 = vld [vmem:[%s3489_s9 + $0x18] sm:$0xff] (!%p2684_p1)  ;;  %v2241_v32 = vld [vmem:[%s3489_s9 + $0x20] sm:$0xff] (!%p2684_p1)  ;;  %v2242_v33 = vld [vmem:[%s3489_s9 + $0x28] sm:$0xff] (!%p2684_p1) }
 0x4f1   : > { %v2272_v40 = vadd.f32 (!%p2684_p1), %v4192_v37, %v2240_v35  ;;  %v2273_v20 = vadd.f32 (!%p2684_p1), %v2241_v32, %v4198_v29  ;;  %v2274_v0 = vadd.f32 (!%p2684_p1), %v2242_v33, %v4202_v9  ;;  %v2243_v38 = vld [vmem:[%s3489_s9 + $0x30] sm:$0xff] (!%p2684_p1)  ;;  %v2244_v46 = vld [vmem:[%s3489_s9 + $0x38] sm:$0xff] (!%p2684_p1)  ;;  %v2245_v23 = vld [vmem:[%s3489_s9 + $0x40] sm:$0xff] (!%p2684_p1) }
 0x4f2   : > { %2302 = vst.msk [vmem:[%s3489_s9] sm:$0xff] (!%p2684_p1), %vm2301_vm2, %v2269_v27  ;;  %2303 = vst.msk [vmem:[%s3489_s9 + $0x8] sm:$0xff] (!%p2684_p1), %vm2301_vm2, %v2270_v10  ;;  %v2275_v43 = vadd.f32 (!%p2684_p1), %v4196_v22, %v2243_v38  ;;  %v2276_v37 = vadd.f32 (!%p2684_p1), %v4200_v15, %v2244_v46  ;;  %v2277_v29 = vadd.f32 (!%p2684_p1), %v2245_v23, %v4206_v8  ;;  %v2246_v9 = vld [vmem:[%s3489_s9 + $0x48] sm:$0xff] (!%p2684_p1)  ;;  %v2247_v14 = vld [vmem:[%s3489_s9 + $0x50] sm:$0xff] (!%p2684_p1) }
 0x4f3   : > { %2304 = vst.msk [vmem:[%s3489_s9 + $0x10] sm:$0xff] (!%p2684_p1), %vm2301_vm2, %v2271_v19  ;;  %v2248_v45 = vld [vmem:[%s3489_s9 + $0x58] sm:$0xff] (!%p2684_p1)  ;;  %2305 = vst.msk [vmem:[%s3489_s9 + $0x18] sm:$0xff] (!%p2684_p1), %vm2301_vm2, %v2272_v40  ;;  %v2278_v22 = vadd.f32 (!%p2684_p1), %v2246_v9, %v4210_v7  ;;  %v2279_v15 = vadd.f32 (!%p2684_p1), %v4204_v59, %v2247_v14  ;;  %v2249_v1 = vld [vmem:[%s3489_s9 + $0x60] sm:$0xff] (!%p2684_p1) }
 0x4f4   : > { %2306 = vst.msk [vmem:[%s3489_s9 + $0x20] sm:$0xff] (!%p2684_p1), %vm2301_vm2, %v2273_v20  ;;  %2307 = vst.msk [vmem:[%s3489_s9 + $0x28] sm:$0xff] (!%p2684_p1), %vm2301_vm2, %v2274_v0  ;;  %v2280_v8 = vadd.f32 (!%p2684_p1), %v4208_v4, %v2248_v45  ;;  %v2250_v57 = vld [vmem:[%s3489_s9 + $0x68] sm:$0xff] (!%p2684_p1)  ;;  %v2251_v51 = vld [vmem:[%s3489_s9 + $0x70] sm:$0xff] (!%p2684_p1)  ;;  %v2281_v7 = vadd.f32 (!%p2684_p1), %v2249_v1, %v4214_v50 }
 0x4f5   : > { %2308 = vst.msk [vmem:[%s3489_s9 + $0x30] sm:$0xff] (!%p2684_p1), %vm2301_vm2, %v2275_v43  ;;  %2309 = vst.msk [vmem:[%s3489_s9 + $0x38] sm:$0xff] (!%p2684_p1), %vm2301_vm2, %v2276_v37  ;;  %v2282_v59 = vadd.f32 (!%p2684_p1), %v2250_v57, %v4218_v56  ;;  %v2283_v4 = vadd.f32 (!%p2684_p1), %v4212_v53, %v2251_v51  ;;  %v2252_v48 = vld [vmem:[%s3489_s9 + $0x78] sm:$0xff] (!%p2684_p1)  ;;  %v2253_v11 = vld [vmem:[%s3489_s9 + $0x80] sm:$0xff] (!%p2684_p1) }
 0x4f6   : > { %2310 = vst.msk [vmem:[%s3489_s9 + $0x40] sm:$0xff] (!%p2684_p1), %vm2301_vm2, %v2277_v29  ;;  %v2254_v49 = vld [vmem:[%s3489_s9 + $0x88] sm:$0xff] (!%p2684_p1)  ;;  %2311 = vst.msk [vmem:[%s3489_s9 + $0x48] sm:$0xff] (!%p2684_p1), %vm2301_vm2, %v2278_v22  ;;  %v2284_v50 = vadd.f32 (!%p2684_p1), %v4216_v47, %v2252_v48  ;;  %v2285_v56 = vadd.f32 (!%p2684_p1), %v2253_v11, %v4222_v6  ;;  %v2255_v44 = vld [vmem:[%s3489_s9 + $0x90] sm:$0xff] (!%p2684_p1) }
 0x4f7   : > { %2312 = vst.msk [vmem:[%s3489_s9 + $0x50] sm:$0xff] %vm2301_vm2, %v2279_v15  ;;  %2313 = vst.msk [vmem:[%s3489_s9 + $0x58] sm:$0xff] %vm2301_vm2, %v2280_v8  ;;  %v2286_v53 = vadd.f32 %v2254_v49, %v4226_v3  ;;  %v2256_v34 = vld [vmem:[%s3489_s9 + $0x98] sm:$0xff]  ;;  %v2257_v30 = vld [vmem:[%s3489_s9 + $0xa0] sm:$0xff]  ;;  %v2287_v47 = vadd.f32 %v4220_v61, %v2255_v44 }
 0x4f8   : > { %2314 = vst.msk [vmem:[%s3489_s9 + $0x60] sm:$0xff] %vm2301_vm2, %v2281_v7  ;;  %2315 = vst.msk [vmem:[%s3489_s9 + $0x68] sm:$0xff] %vm2301_vm2, %v2282_v59  ;;  %v2288_v6 = vadd.f32 %v4224_v42, %v2256_v34  ;;  %v2289_v3 = vadd.f32 %v2257_v30, %v4230_v52  ;;  %v2258_v2 = vld [vmem:[%s3489_s9 + $0xa8] sm:$0xff]  ;;  %v2259_v60 = vld [vmem:[%s3489_s9 + $0xb0] sm:$0xff] }
 0x4f9   : > { %2316 = vst.msk [vmem:[%s3489_s9 + $0x70] sm:$0xff] %vm2301_vm2, %v2283_v4  ;;  %v2260_v21 = vld [vmem:[%s3489_s9 + $0xb8] sm:$0xff]  ;;  %2317 = vst.msk [vmem:[%s3489_s9 + $0x78] sm:$0xff] %vm2301_vm2, %v2284_v50  ;;  %v2290_v61 = vadd.f32 %v2258_v2, %v4234_v25  ;;  %v2291_v42 = vadd.f32 %v4228_v41, %v2259_v60  ;;  %v2261_v55 = vld [vmem:[%s3489_s9 + $0xc0] sm:$0xff] }
 0x4fa   : > { %2318 = vst.msk [vmem:[%s3489_s9 + $0x80] sm:$0xff] %vm2301_vm2, %v2285_v56  ;;  %2319 = vst.msk [vmem:[%s3489_s9 + $0x88] sm:$0xff] %vm2301_vm2, %v2286_v53  ;;  %v2292_v52 = vadd.f32 %v4232_v13, %v2260_v21  ;;  %v2262_v62 = vld [vmem:[%s3489_s9 + $0xc8] sm:$0xff]  ;;  %v2263_v63 = vld [vmem:[%s3489_s9 + $0xd0] sm:$0xff]  ;;  %v2293_v25 = vadd.f32 %v2261_v55, %v4238_v17 }
 0x4fb   : > { %2320 = vst.msk [vmem:[%s3489_s9 + $0x90] sm:$0xff] %vm2301_vm2, %v2287_v47  ;;  %2321 = vst.msk [vmem:[%s3489_s9 + $0x98] sm:$0xff] %vm2301_vm2, %v2288_v6  ;;  %v2294_v41 = vadd.f32 %v2262_v62, %v4242_v31  ;;  %v2295_v13 = vadd.f32 %v4236_v58, %v2263_v63  ;;  %v2264_v28 = vld [vmem:[%s3489_s9 + $0xd8] sm:$0xff]  ;;  %v2265_v12 = vld [vmem:[%s3489_s9 + $0xe0] sm:$0xff] }
 0x4fc   : > { %2322 = vst.msk [vmem:[%s3489_s9 + $0xa0] sm:$0xff] %vm2301_vm2, %v2289_v3  ;;  %v2266_v36 = vld [vmem:[%s3489_s9 + $0xe8] sm:$0xff]  ;;  %2323 = vst.msk [vmem:[%s3489_s9 + $0xa8] sm:$0xff] %vm2301_vm2, %v2290_v61  ;;  %v2296_v17 = vadd.f32 %v4240_v26, %v2264_v28  ;;  %v2297_v31 = vadd.f32 %v2265_v12, %v4246_v16  ;;  %v2267_v54 = vld [vmem:[%s3489_s9 + $0xf0] sm:$0xff] }
 0x4fd   : > { %2324 = vst.msk [vmem:[%s3489_s9 + $0xb0] sm:$0xff] %vm2301_vm2, %v2291_v42  ;;  %2325 = vst.msk [vmem:[%s3489_s9 + $0xb8] sm:$0xff] %vm2301_vm2, %v2292_v52  ;;  %v2298_v58 = vadd.f32 %v2266_v36, %v4250_v24  ;;  %v2268_v39 = vld [vmem:[%s3489_s9 + $0xf8] sm:$0xff]  ;;  %v2299_v27 = vadd.f32 %v4244_v5, %v2267_v54 }
 0x4fe   : > { %2326 = vst.msk [vmem:[%s3489_s9 + $0xc0] sm:$0xff] %vm2301_vm2, %v2293_v25  ;;  %2327 = vst.msk [vmem:[%s3489_s9 + $0xc8] sm:$0xff] %vm2301_vm2, %v2294_v41  ;;  %v2300_v10 = vadd.f32 %v4248_v18, %v2268_v39 }
 0x4ff   : > { %2328 = vst.msk [vmem:[%s3489_s9 + $0xd0] sm:$0xff] %vm2301_vm2, %v2295_v13  ;;  %2329 = vst.msk [vmem:[%s3489_s9 + $0xd8] sm:$0xff] %vm2301_vm2, %v2296_v17 }
 0x500   : > { %2330 = vst.msk [vmem:[%s3489_s9 + $0xe0] sm:$0xff] %vm2301_vm2, %v2297_v31  ;;  %2331 = vst.msk [vmem:[%s3489_s9 + $0xe8] sm:$0xff] %vm2301_vm2, %v2298_v58 }
 0x501   : > { %2332 = vst.msk [vmem:[%s3489_s9 + $0xf0] sm:$0xff] %vm2301_vm2, %v2299_v27  ;;  %2333 = vst.msk [vmem:[%s3489_s9 + $0xf8] sm:$0xff] %vm2301_vm2, %v2300_v10 }
 0x502 PF: > { %s2686_s7 = sshll.u32 %s3352_s24, 6  ;;  %s2687_s19 = sshll.u32 %s3356_s25, 8 }
 0x503   : > { %s2366_s20 = sshll.u32 %s4048_s12, 4  ;;  %s2363_s30 = sadd.s32 %s2687_s19, %s2686_s7  ;;  %s4484_s20 = int_to_ptr.vmem [resolvable:$true] %s2366_s20 }
 0x504   : > { %s2688_s13 = sshll.u32 %s2363_s30, 6  ;;  %s4493_s16 = scalar_lea.sflag [#allocation3], %s365_s29 }
 0x505   : > { %s4489_s9 = scalar_lea.hbm %s4551_s6, %s2688_s13  ;;  %s3274_s17 = scalar_lea.vmem %s4484_s20, 4096 }
 0x506   : > { %p3275_p2 = scmp.ne.s32.totalorder %s4484_s20, %s3274_s17  ;;  %s3370_s24 = smov [#allocation2]  }
 0x507   : > { %s3278_s25 = sshll.u32 %s3370_s24, 4  ;;  %s3279_s25 = int_to_ptr.vmem [resolvable:$false] %s3278_s25 }
 0x508   : > { %p3276_p4 = pnand %p3275_p2, %p3459_p3  ;;  %s3280_s12 = scalar_lea.vmem %s3279_s25, 8192 }
 0x509   : > { %p3281_p6 = scmp.lt.s32.totalorder %s4484_s20, %s3279_s25  ;;  %p3282_p7 = scmp.lt.s32.totalorder %s3280_s12, %s3274_s17 }
 0x50a   : > { %p3277_p5 = pneg %p3276_p4 }
 0x50b   : > { %p3283_p9 = por %p3282_p7, %p3281_p6 }
 0x50d   : > { %p3284_p10 = pnand %p3283_p9, %p3277_p5 }
 0x50f   : > { %3287 = shalt.err (!%p3284_p10)
}
 0x510   : > { %s3288_s29 = scalar_lea.hbm %s4489_s9, 4096  ;;  %s3292_s19 = scalar_lea.hbm %s4551_s6, 32768 }
 0x511   : > { %p3289_p11 = scmp.ne.s32.totalorder %s4489_s9, %s3288_s29  ;;  %p3293_p0 = scmp.lt.u32.totalorder %s4489_s9, %s4551_s6 }
 0x512   : > { %p3294_p1 = scmp.lt.u32.totalorder %s3292_s19, %s3288_s29  ;;  %p3296_p4 = scmp.lt.u32.totalorder %s3288_s29, %s4489_s9 }
 0x513   : > { %p3290_p12 = pnand %p3289_p11, %p3459_p3 }
 0x514   : > { %p3295_p2 = por %p3294_p1, %p3293_p0 }
 0x515   : > { %p3291_p13 = pneg %p3290_p12 }
 0x516   : > { %p3297_p5 = por %p3296_p4, %p3295_p2 }
 0x518   : > { %p3298_p6 = pnand %p3297_p5, %p3291_p13 }
 0x51a   : > { %3301 = shalt.err (!%p3298_p6)
}
 0x51b   : > { %s3371_s14 = smov 128   ;;  %s3372_s8 = smov 8  }
 0x51c   : > { %2960 = dma.vmem_to_hbm [thread:$0]  (%p3459_p3), %s4484_s20, 4096, %s4489_s9, %s4493_s16, %s3371_s14, %s3371_s14, %s3372_s8  }
 0x51d PF: > { %p2966_p7 = scmp.ge.s32.totalorder %s3368_s28, 2  ;;  %s2393_s17 = sand.u32 1, %s3340_s21  }
 0x51e   : > { %s2394_s24 = scalar_lea.sflag [#allocation3], %s2393_s17 }
 0x51f   : > { %p2963_p9 = pnand %p2966_p7, %p3468_p8 }
 0x521   : > { %3335 = dma.done.wait (!%p2963_p9), %s2394_s24, 4096  }
 0x522   : > { %3337 = vsyncadd (!%p2963_p9), %s2394_s24, 4294963200  ;;  %s20_s28 = sadd.s32 1, %s3368_s28   ;;  %s4640_s10 = sld [smem:[#allocation5_spill]] }
 0x523   : > { %p17_p10 = scmp.ge.s32.totalorder %s20_s28, 10   ;;  %s4641_s20 = sld [smem:[#allocation6_spill]] }
 0x524   : > { %s4642_s21 = smov %s3344_s22  ;;  %s4643_s22 = smov %s3348_s23 }
 0x525   : > { %s4644_s23 = smov %s3477_s15  ;;  %s4645_s24 = smov %s3360_s26 }
 0x526   : > { %s4646_s25 = smov %s3364_s27  ;;  %19 = sbr.rel (!%p17_p10) target bundleno = 5 (0x5), region = 104 }
 0x528   : > { %s4647_s26 = smov %s4640_s10 }
 0x529   : > { %s4648_s27 = smov %s4641_s20 }
 0x52d   :  { %2399 = vsyncpa [#allocation3], 1 }
 0x52e   :  { %2401 = vsyncpa [#allocation3 + $0x1], 1 }

</bundles_post_ra>
